<compile_context>
chip_gen: v5e
topology: v5e:2x2
jax: 0.10.0
libtpu: 0.0.40
codegen_flags: <defaults>
</compile_context>

<pallas_src>
import jax
import jax.numpy as jnp
from jax.experimental import pallas as pl
from jax.experimental.pallas import tpu as pltpu


# ---------------- Pallas kernel ----------------
def attflat_kernel(x_ref, maskb_ref, w1_ref, b1_ref, w2_ref, b2_ref,
                   wm_ref, bm_ref, out_ref):
    TB, S, H = x_ref.shape                 # S is the padded sequence length
    G = w2_ref.shape[1]

    x = x_ref[...]                         # (TB, S, H), compute dtype (bf16)
    xf = x.reshape(TB * S, H)              # layout-preserving (S padded to pack)

    # ---- MLP: Linear(H->MID) + ReLU (dropout is identity at inference) ----
    # TODO(synk): training-mode dropout not implemented; eval semantics only.
    h = jnp.dot(xf, w1_ref[...], preferred_element_type=jnp.float32) + b1_ref[...]
    h = jnp.maximum(h, 0.0).astype(x.dtype)                      # (TB*S, MID)

    # ---- Linear(MID->G): attention logits (f32 accumulation) ----
    att = jnp.dot(h, w2_ref[...], preferred_element_type=jnp.float32) + b2_ref[...]
    att = att.reshape(TB, S, G) + maskb_ref[...]   # additive 0/-1e9 pad bias

    # ---- softmax over the sequence (sublane) axis, f32 math, no transpose ----
    att = att - jnp.max(att, axis=1, keepdims=True)
    e = jnp.exp(att)
    # approx reciprocal: EUP vrcp, ~1e-3-level error vs exact division
    # (covered by the bf16 tolerance; use approx=False if exact parity matters).
    att = e * pl.reciprocal(jnp.sum(e, axis=1, keepdims=True), approx=True)

    # ---- glimpse pooling on the VPU: broadcast att over H lanes, reduce S ----
    xf32 = x.astype(jnp.float32)
    wm = wm_ref[...]                                  # (G*H, OUT_P), compute dtype
    out = bm_ref[...]                                 # (1, OUT_P) f32
    for g in range(G):                                # G is a small static int
        pooled_g = jnp.sum(att[:, :, g:g + 1] * xf32, axis=1)    # (TB, H) f32
        out = out + jnp.dot(pooled_g.astype(x.dtype),
                            wm[g * H:(g + 1) * H, :],
                            preferred_element_type=jnp.float32)
    out_ref[...] = out.astype(out_ref.dtype)


# ---------------- Tile-size derivation ----------------
def _max_block_b(S_P, H, MID, G, OUT_P, cdb, vmem_budget):
    """Largest batch tile whose per-step working set fits the VMEM budget."""
    # Bytes that don't scale with TB: single-buffered weights + biases.
    fixed = (H * MID + MID * G + G * H * OUT_P) * cdb + (MID + G + OUT_P) * 4
    # Bytes per batch row per grid step (double-buffered I/O + intermediates).
    per_row = (2 * S_P * H * cdb          # x block, double-buffered
               + 2 * S_P * 4              # mask-bias block, double-buffered
               + 2 * OUT_P * 4            # output block, double-buffered
               + S_P * MID * (4 + cdb)    # h in f32 + compute-dtype copy
               + S_P * (G + 2) * 4        # logits / softmax temporaries
               + S_P * H * 4              # f32 copy of x for VPU pooling
               + (G + 2) * H * 4          # pooled glimpses
               + 2 * OUT_P * 4)           # f32 accumulator / epilogue
    tb = (vmem_budget - fixed) // per_row
    # >= 8 sublanes; beyond ~512 rows per step there is little MXU / per-step
    # overhead benefit on any generation (v5e MXU saturates at M=128).
    return int(max(8, min(tb, 512)))


# ---------------- Wrapper ----------------
def attflat(x, x_mask, params, *, block_b=None, compute_dtype=jnp.bfloat16):
    """x: (B, S, H) f32; x_mask: (B, 1, 1, S) bool (True == padded).
    Returns (x_s, x_atted) like the PyTorch module."""
    w1, b1, w2, b2, wm, bm = params
    B, S, H = x.shape
    MID = w1.shape[1]
    G = w2.shape[1]
    OUT = wm.shape[-1]

    cd = jnp.dtype(compute_dtype)
    cdb = cd.itemsize

    # Pad S to the sublane pack of the compute dtype (16 for bf16, 8 for f32)
    # so the in-kernel (TB, S, H) -> (TB*S, H) reshape is layout-preserving.
    spack = 8 * (4 // cdb)
    S_P = ((S + spack - 1) // spack) * spack

    # Lane-dense output: pad OUT to a multiple of 128 only when necessary.
    OUT_P = ((OUT + 127) // 128) * 128

    # Generation-aware VMEM budget; conservative fallback = v7x 64 MiB per TC.
    try:
        vmem_cap = int(pltpu.get_tpu_info().vmem_capacity_bytes)
    except Exception:  # hardware query unavailable -> assume the smallest VMEM
        vmem_cap = 64 * 1024 * 1024
    vmem_limit = min(vmem_cap * 3 // 4, 96 * 1024 * 1024)   # 48 MiB on v7x, 96 on v5e/v6e
    vmem_limit = max(vmem_limit, 32 * 1024 * 1024)

    # Derive the batch tile and pad B so the grid has >= 2 steps (v7x megacore).
    if block_b is None:
        tb_max = _max_block_b(S_P, H, MID, G, OUT_P, cdb, int(vmem_limit * 0.85))
        if B <= 8:
            TB = B
            n_steps = 1
        else:
            n_steps = max(2, -(-B // tb_max))            # cdiv, at least 2 steps
            rows = -(-B // n_steps)                      # cdiv
            TB = -(-rows // 8) * 8                       # round up to 8 sublanes
    else:
        TB = int(block_b)
        n_steps = -(-B // TB)
        assert TB == B or TB % 8 == 0, "block_b must be a multiple of 8 (or == B)"
    B_P = n_steps * TB

    # ---- operand preparation (all padding happens once, outside the kernel) ----
    x_c = x.astype(cd)
    # Additive pad-mask bias in the natural (B, S, 1) layout: 0 valid, -1e9 padded.
    maskb = jnp.where(x_mask.reshape(B, S), -1e9, 0.0).astype(jnp.float32)[..., None]

    pad_b, pad_s = B_P - B, S_P - S
    if pad_b or pad_s:
        x_c = jnp.pad(x_c, ((0, pad_b), (0, pad_s), (0, 0)))
        maskb = jnp.pad(maskb, ((0, pad_b), (0, pad_s), (0, 0)),
                        constant_values=-1e9)

    wm2 = wm.reshape(G * H, OUT)
    bm2 = bm.reshape(1, OUT)
    if OUT_P != OUT:
        wm2 = jnp.pad(wm2, ((0, 0), (0, OUT_P - OUT)))
        bm2 = jnp.pad(bm2, ((0, 0), (0, OUT_P - OUT)))

    ops = (x_c, maskb,
           w1.astype(cd), b1.reshape(1, MID).astype(jnp.float32),
           w2.astype(cd), b2.reshape(1, G).astype(jnp.float32),
           wm2.astype(cd), bm2.astype(jnp.float32))

    # Grid-invariant weights: constant index_map (never re-DMA'd); single buffer
    # to save VMEM headroom (most valuable on v7x's 64 MiB).
    def wspec(shape):
        idx = lambda b: (0,) * len(shape)
        try:
            return pl.BlockSpec(shape, idx, pipeline_mode=pl.Buffered(1))
        except (TypeError, AttributeError):   # older API without pipeline_mode
            return pl.BlockSpec(shape, idx)

    call = pl.pallas_call(
        attflat_kernel,
        out_shape=jax.ShapeDtypeStruct((B_P, OUT_P), jnp.float32),
        grid_spec=pltpu.PrefetchScalarGridSpec(
            num_scalar_prefetch=0,
            grid=(B_P // TB,),
            in_specs=[
                pl.BlockSpec((TB, S_P, H), lambda b: (b, 0, 0)),   # x
                pl.BlockSpec((TB, S_P, 1), lambda b: (b, 0, 0)),   # mask bias
                wspec((H, MID)),                                   # w1
                wspec((1, MID)),                                   # b1
                wspec((MID, G)),                                   # w2
                wspec((1, G)),                                     # b2
                wspec((G * H, OUT_P)),                             # merge W
                wspec((1, OUT_P)),                                 # merge b
            ],
            out_specs=pl.BlockSpec((TB, OUT_P), lambda b: (b, 0)),
        ),
        compiler_params=pltpu.CompilerParams(
            dimension_semantics=("parallel",),
            vmem_limit_bytes=int(vmem_limit),
        ),
    )
    x_atted = call(*ops)

    if pad_b:
        x_atted = x_atted[:B]
    if OUT_P != OUT:
        x_atted = x_atted[:, :OUT]
    return x, x_atted


# ---------------- Pure-JAX reference (for verification) ----------------
def attflat_ref(x, x_mask, params):
    w1, b1, w2, b2, wm, bm = params
    B, S, H = x.shape
    G = w2.shape[1]
    OUT = wm.shape[-1]
    h = jnp.maximum(x @ w1 + b1, 0.0)
    att = h @ w2 + b2                                          # (B, S, G)
    att = jnp.where(x_mask.reshape(B, S, 1), -1e9, att)
    att = jax.nn.softmax(att, axis=1)
    pooled = jnp.einsum('bsg,bsh->bgh', att, x).reshape(B, G * H)
    x_atted = pooled @ wm.reshape(G * H, OUT) + bm.reshape(OUT)
    return x, x_atted


# ---------------- Deterministic setup & run ----------------
if __name__ == "__main__":
    # Small stand-ins for __C.HIDDEN_SIZE, FLAT_MLP_SIZE, FLAT_GLIMPSES, FLAT_OUT_SIZE.
    B, S = 16, 8
    H, MID, G, OUT = 32, 64, 2, 64

    key = jax.random.PRNGKey(0)
    ks = jax.random.split(key, 8)

    x = jax.random.normal(ks[0], (B, S, H), dtype=jnp.float32)
    # Pad mask: trailing positions per batch row are padded (True == padded).
    seq_ids = jnp.arange(S)[None, :]
    valid_len = (3 + (jnp.arange(B) % (S - 3)))[:, None]       # lengths in [3, S-1]
    x_mask = (seq_ids >= valid_len).reshape(B, 1, 1, S)

    # Parameters. Merge weight stored as (G, H, OUT) == torch Linear(H*G, OUT).weight.T
    # reshaped, matching the torch.cat glimpse order.
    w1 = 0.1 * jax.random.normal(ks[1], (H, MID), dtype=jnp.float32)
    b1 = 0.1 * jax.random.normal(ks[2], (1, MID), dtype=jnp.float32)
    w2 = 0.1 * jax.random.normal(ks[3], (MID, G), dtype=jnp.float32)
    b2 = 0.1 * jax.random.normal(ks[4], (1, G), dtype=jnp.float32)
    wm = 0.1 * jax.random.normal(ks[5], (G, H, OUT), dtype=jnp.float32)
    bm = 0.1 * jax.random.normal(ks[6], (1, OUT), dtype=jnp.float32)
    params = (w1, b1, w2, b2, wm, bm)

    x_s, x_atted = attflat(x, x_mask, params)
    jax.block_until_ready(x_atted)

    x_s_ref, x_atted_ref = attflat_ref(x, x_mask, params)
    assert x_s.shape == (B, S, H) and x_atted.shape == (B, OUT)
    assert jnp.allclose(x_s, x_s_ref)
    # bf16 matmul operands -> loosened tolerance vs the f32 reference.
    assert jnp.allclose(x_atted, x_atted_ref, atol=3e-2, rtol=3e-2)

    print("KERNEL_OK")
</pallas_src>

<mosaic_0001>
module attributes {stable_mosaic.version = 11 : i64} {
  func.func @attflat_kernel(%arg0: i32, %arg1: memref<8x16x32xbf16, #tpu.memory_space<vmem>>, %arg2: memref<8x16x1xf32, #tpu.memory_space<vmem>>, %arg3: memref<32x64xbf16, #tpu.memory_space<vmem>>, %arg4: memref<1x64xf32, #tpu.memory_space<vmem>>, %arg5: memref<64x2xbf16, #tpu.memory_space<vmem>>, %arg6: memref<1x2xf32, #tpu.memory_space<vmem>>, %arg7: memref<64x128xbf16, #tpu.memory_space<vmem>>, %arg8: memref<1x128xf32, #tpu.memory_space<vmem>>, %arg9: memref<8x128xf32, #tpu.memory_space<vmem>>) attributes {dimension_semantics = [#tpu.dimension_semantics<parallel>], iteration_bounds = array<i64: 2>, scalar_prefetch = 0 : i64, scratch_operands = 0 : i64, tpu.core_type = #tpu.core_type<tc>, window_params = [{transform_indices = @transform_0, window_bounds = array<i64: 8, 16, 32>}, {transform_indices = @transform_1, window_bounds = array<i64: 8, 16, 1>}, {pipeline_mode = #tpu.pipeline_mode<synchronous>, transform_indices = @transform_2, window_bounds = array<i64: 32, 64>}, {pipeline_mode = #tpu.pipeline_mode<synchronous>, transform_indices = @transform_3, window_bounds = array<i64: 1, 64>}, {pipeline_mode = #tpu.pipeline_mode<synchronous>, transform_indices = @transform_4, window_bounds = array<i64: 64, 2>}, {pipeline_mode = #tpu.pipeline_mode<synchronous>, transform_indices = @transform_5, window_bounds = array<i64: 1, 2>}, {pipeline_mode = #tpu.pipeline_mode<synchronous>, transform_indices = @transform_6, window_bounds = array<i64: 64, 128>}, {pipeline_mode = #tpu.pipeline_mode<synchronous>, transform_indices = @transform_7, window_bounds = array<i64: 1, 128>}, {transform_indices = @transform_8, window_bounds = array<i64: 8, 128>}]} {
    %c0 = arith.constant 0 : index
    %c0_0 = arith.constant 0 : index
    %c0_1 = arith.constant 0 : index
    %0 = vector.load %arg1[%c0, %c0_0, %c0_1] : memref<8x16x32xbf16, #tpu.memory_space<vmem>>, vector<8x16x32xbf16>
    %1 = vector.shape_cast %0 : vector<8x16x32xbf16> to vector<128x32xbf16>
    %c0_2 = arith.constant 0 : index
    %c0_3 = arith.constant 0 : index
    %2 = vector.load %arg3[%c0_2, %c0_3] : memref<32x64xbf16, #tpu.memory_space<vmem>>, vector<32x64xbf16>
    %cst = arith.constant dense<0.000000e+00> : vector<128x64xf32>
    %3 = tpu.matmul %1, %2, %cst {dimension_numbers = #tpu.dot_dimension_numbers<[1], [0], [0], [1], [0, 0, 1, 1], [], []>} : vector<128x32xbf16>, vector<32x64xbf16>, vector<128x64xf32> -> vector<128x64xf32>
    %c0_4 = arith.constant 0 : index
    %c0_5 = arith.constant 0 : index
    %4 = vector.load %arg4[%c0_4, %c0_5] : memref<1x64xf32, #tpu.memory_space<vmem>>, vector<1x64xf32>
    %5 = vector.broadcast %4 : vector<1x64xf32> to vector<128x64xf32>
    %6 = arith.addf %3, %5 : vector<128x64xf32>
    %cst_6 = arith.constant 0.000000e+00 : f32
    %7 = vector.broadcast %cst_6 : f32 to vector<128x64xf32>
    %8 = arith.maximumf %6, %7 : vector<128x64xf32>
    %9 = arith.truncf %8 : vector<128x64xf32> to vector<128x64xbf16>
    %c0_7 = arith.constant 0 : index
    %c0_8 = arith.constant 0 : index
    %10 = vector.load %arg5[%c0_7, %c0_8] : memref<64x2xbf16, #tpu.memory_space<vmem>>, vector<64x2xbf16>
    %cst_9 = arith.constant dense<0.000000e+00> : vector<128x2xf32>
    %11 = tpu.matmul %9, %10, %cst_9 {dimension_numbers = #tpu.dot_dimension_numbers<[1], [0], [0], [1], [0, 0, 1, 1], [], []>} : vector<128x64xbf16>, vector<64x2xbf16>, vector<128x2xf32> -> vector<128x2xf32>
    %c0_10 = arith.constant 0 : index
    %c0_11 = arith.constant 0 : index
    %12 = vector.load %arg6[%c0_10, %c0_11] : memref<1x2xf32, #tpu.memory_space<vmem>>, vector<1x2xf32>
    %13 = vector.broadcast %12 : vector<1x2xf32> to vector<128x2xf32>
    %14 = arith.addf %11, %13 : vector<128x2xf32>
    %15 = vector.shape_cast %14 : vector<128x2xf32> to vector<8x16x2xf32>
    %c0_12 = arith.constant 0 : index
    %c0_13 = arith.constant 0 : index
    %c0_14 = arith.constant 0 : index
    %16 = vector.load %arg2[%c0_12, %c0_13, %c0_14] : memref<8x16x1xf32, #tpu.memory_space<vmem>>, vector<8x16x1xf32>
    %17 = vector.broadcast %16 : vector<8x16x1xf32> to vector<8x16x2xf32>
    %18 = arith.addf %15, %17 : vector<8x16x2xf32>
    %cst_15 = arith.constant dense<0xFF800000> : vector<8x2xf32>
    %19 = vector.multi_reduction <maximumf>, %18, %cst_15 [1] : vector<8x16x2xf32> to vector<8x2xf32>
    %20 = vector.shape_cast %19 : vector<8x2xf32> to vector<8x1x2xf32>
    %21 = vector.broadcast %20 : vector<8x1x2xf32> to vector<8x16x2xf32>
    %22 = arith.subf %18, %21 : vector<8x16x2xf32>
    %23 = math.exp %22 : vector<8x16x2xf32>
    %cst_16 = arith.constant dense<0.000000e+00> : vector<8x2xf32>
    %24 = vector.multi_reduction <add>, %23, %cst_16 [1] : vector<8x16x2xf32> to vector<8x2xf32>
    %25 = vector.shape_cast %24 : vector<8x2xf32> to vector<8x1x2xf32>
    %26 = tpu.reciprocal %25 {approx = true} : vector<8x1x2xf32> -> vector<8x1x2xf32>
    %27 = vector.broadcast %26 : vector<8x1x2xf32> to vector<8x16x2xf32>
    %28 = arith.mulf %23, %27 : vector<8x16x2xf32>
    %29 = arith.extf %0 : vector<8x16x32xbf16> to vector<8x16x32xf32>
    %c0_17 = arith.constant 0 : index
    %c0_18 = arith.constant 0 : index
    %30 = vector.load %arg7[%c0_17, %c0_18] : memref<64x128xbf16, #tpu.memory_space<vmem>>, vector<64x128xbf16>
    %c0_19 = arith.constant 0 : index
    %c0_20 = arith.constant 0 : index
    %31 = vector.load %arg8[%c0_19, %c0_20] : memref<1x128xf32, #tpu.memory_space<vmem>>, vector<1x128xf32>
    %32 = vector.extract_strided_slice %28 {offsets = [0, 0, 0], sizes = [8, 16, 1], strides = [1, 1, 1]} : vector<8x16x2xf32> to vector<8x16x1xf32>
    %33 = vector.broadcast %32 : vector<8x16x1xf32> to vector<8x16x32xf32>
    %34 = arith.mulf %33, %29 : vector<8x16x32xf32>
    %cst_21 = arith.constant dense<0.000000e+00> : vector<8x32xf32>
    %35 = vector.multi_reduction <add>, %34, %cst_21 [1] : vector<8x16x32xf32> to vector<8x32xf32>
    %36 = arith.truncf %35 : vector<8x32xf32> to vector<8x32xbf16>
    %37 = vector.extract_strided_slice %30 {offsets = [0, 0], sizes = [32, 128], strides = [1, 1]} : vector<64x128xbf16> to vector<32x128xbf16>
    %cst_22 = arith.constant dense<0.000000e+00> : vector<8x128xf32>
    %38 = tpu.matmul %36, %37, %cst_22 {dimension_numbers = #tpu.dot_dimension_numbers<[1], [0], [0], [1], [0, 0, 1, 1], [], []>} : vector<8x32xbf16>, vector<32x128xbf16>, vector<8x128xf32> -> vector<8x128xf32>
    %39 = vector.broadcast %31 : vector<1x128xf32> to vector<8x128xf32>
    %40 = arith.addf %39, %38 : vector<8x128xf32>
    %41 = vector.extract_strided_slice %28 {offsets = [0, 0, 1], sizes = [8, 16, 1], strides = [1, 1, 1]} : vector<8x16x2xf32> to vector<8x16x1xf32>
    %42 = vector.broadcast %41 : vector<8x16x1xf32> to vector<8x16x32xf32>
    %43 = arith.mulf %42, %29 : vector<8x16x32xf32>
    %cst_23 = arith.constant dense<0.000000e+00> : vector<8x32xf32>
    %44 = vector.multi_reduction <add>, %43, %cst_23 [1] : vector<8x16x32xf32> to vector<8x32xf32>
    %45 = arith.truncf %44 : vector<8x32xf32> to vector<8x32xbf16>
    %46 = vector.extract_strided_slice %30 {offsets = [32, 0], sizes = [32, 128], strides = [1, 1]} : vector<64x128xbf16> to vector<32x128xbf16>
    %cst_24 = arith.constant dense<0.000000e+00> : vector<8x128xf32>
    %47 = tpu.matmul %45, %46, %cst_24 {dimension_numbers = #tpu.dot_dimension_numbers<[1], [0], [0], [1], [0, 0, 1, 1], [], []>} : vector<8x32xbf16>, vector<32x128xbf16>, vector<8x128xf32> -> vector<8x128xf32>
    %48 = arith.addf %40, %47 : vector<8x128xf32>
    %c0_25 = arith.constant 0 : index
    %c0_26 = arith.constant 0 : index
    %49 = vector.load %arg9[%c0_25, %c0_26] : memref<8x128xf32, #tpu.memory_space<vmem>>, vector<8x128xf32>
    tpu.vector_store %arg9[%c0_25, %c0_26], %48 {strides = array<i32>} : memref<8x128xf32, #tpu.memory_space<vmem>>, vector<8x128xf32>,
    return
  }
  func.func @transform_0(%arg0: i32) -> (i32, i32, i32) {
    %c0_i32 = arith.constant 0 : i32
    %c0_i32_0 = arith.constant 0 : i32
    %c0_i32_1 = arith.constant 0 : i32
    return %arg0, %c0_i32, %c0_i32_0 : i32, i32, i32
  }
  func.func @transform_1(%arg0: i32) -> (i32, i32, i32) {
    %c0_i32 = arith.constant 0 : i32
    %c0_i32_0 = arith.constant 0 : i32
    %c0_i32_1 = arith.constant 0 : i32
    return %arg0, %c0_i32, %c0_i32_0 : i32, i32, i32
  }
  func.func @transform_2(%arg0: i32) -> (i32, i32) {
    %c0_i32 = arith.constant 0 : i32
    %c0_i32_0 = arith.constant 0 : i32
    %c0_i32_1 = arith.constant 0 : i32
    return %c0_i32, %c0_i32_0 : i32, i32
  }
  func.func @transform_3(%arg0: i32) -> (i32, i32) {
    %c0_i32 = arith.constant 0 : i32
    %c0_i32_0 = arith.constant 0 : i32
    %c0_i32_1 = arith.constant 0 : i32
    return %c0_i32, %c0_i32_0 : i32, i32
  }
  func.func @transform_4(%arg0: i32) -> (i32, i32) {
    %c0_i32 = arith.constant 0 : i32
    %c0_i32_0 = arith.constant 0 : i32
    %c0_i32_1 = arith.constant 0 : i32
    return %c0_i32, %c0_i32_0 : i32, i32
  }
  func.func @transform_5(%arg0: i32) -> (i32, i32) {
    %c0_i32 = arith.constant 0 : i32
    %c0_i32_0 = arith.constant 0 : i32
    %c0_i32_1 = arith.constant 0 : i32
    return %c0_i32, %c0_i32_0 : i32, i32
  }
  func.func @transform_6(%arg0: i32) -> (i32, i32) {
    %c0_i32 = arith.constant 0 : i32
    %c0_i32_0 = arith.constant 0 : i32
    %c0_i32_1 = arith.constant 0 : i32
    return %c0_i32, %c0_i32_0 : i32, i32
  }
  func.func @transform_7(%arg0: i32) -> (i32, i32) {
    %c0_i32 = arith.constant 0 : i32
    %c0_i32_0 = arith.constant 0 : i32
    %c0_i32_1 = arith.constant 0 : i32
    return %c0_i32, %c0_i32_0 : i32, i32
  }
  func.func @transform_8(%arg0: i32) -> (i32, i32) {
    %c0_i32 = arith.constant 0 : i32
    %c0_i32_0 = arith.constant 0 : i32
    return %arg0, %c0_i32 : i32, i32
  }
}

</mosaic_0001>

<bundles_post_ra>
// kernel: tpu_custom_call.1
= control target key start
LH: loop header
LB: loop body
LE: loop exit
PB: predicated region body
PF: predicated region fallthrough
CT: control target
= control target key end

     0   :  { %13 = vsyncpa [#allocation3], 0  ;;  %s2392_s0 = inlined_call_operand.vmem [shape: bf16[16,16,32], index: 0, kind: input, shape index: {}]   ;;  %s2393_s1 = inlined_call_operand.vmem [shape: f32[16,16,1], index: 1, kind: input, shape index: {}]   ;;  %s2394_s2 = inlined_call_operand.vmem [shape: bf16[32,64], index: 2, kind: input, shape index: {}]   ;;  %s2395_s3 = inlined_call_operand.vmem [shape: f32[1,64], index: 3, kind: input, shape index: {}]   ;;  %s2396_s4 = inlined_call_operand.vmem [shape: bf16[64,2], index: 4, kind: input, shape index: {}]   ;;  %s2397_s5 = inlined_call_operand.vmem [shape: f32[1,2], index: 5, kind: input, shape index: {}]   ;;  %s2398_s6 = inlined_call_operand.vmem [shape: bf16[64,128], index: 6, kind: input, shape index: {}]   ;;  %s2399_s7 = inlined_call_operand.vmem [shape: f32[1,128], index: 7, kind: input, shape index: {}]   ;;  %s2400_s8 = inlined_call_operand.hbm [shape: f32[16,128], index: 8, kind: output, shape index: {}]  }
   0x1   :  { %15 = vsyncpa [#allocation3 + $0x1], 0  ;;  %s1871_s27 = smov 0   ;;  %s1873_s28 = smov 0  }
   0x2   :  { %s1875_s29 = smov 0   ;;  %s1877_s30 = smov 0  }
   0x3 LB: > { %s1512_s9 = sadd.s32 4294967295, %s1822_s30   ;;  %s1513_s10 = sadd.s32 4294967294, %s1822_s30   ;;  %s1822_s30 = sphi %s1877_s30, %s2406_s30   ;;  %s1818_s29 = sphi %s1875_s29, %s2405_s29   ;;  %s1814_s28 = sphi %s1873_s28, %s2404_s28   ;;  %s1810_s27 = sphi %s1871_s27, %s2403_s27  }
   0x4   : > { %s1894_s11 = sadd.s32 1, %s1822_s30   ;;  %s206_s12 = sadd.s32 1, %s1818_s29 }
   0x5   : > { %s203_s13 = ssub.s32 %s1822_s30, %s1894_s11  ;;  %p216_p0 = scmp.ne.s32.totalorder %s1818_s29, %s1814_s28 }
   0x6   : > { %p204_p1 = scmp.eq.s32.totalorder %s203_s13, 0  ;;  %p217_p2 = scmp.eq.s32.totalorder %s1512_s9, 1 }
   0x7   : > { %p222_p3 = scmp.ne.s32.totalorder %s1814_s28, %s1810_s27  ;;  %p223_p4 = scmp.eq.s32.totalorder %s1513_s10, 1 }
   0x8   : > { %s1904_s14 = scalar_select %p204_p1, %s1818_s29, %s206_s12  }
   0x9   : > { %p1906_p5 = por %p217_p2, %p216_p0  ;;  %p1910_p6 = por %p223_p4, %p222_p3 }
   0xa   : > { %p1516_p7 = scmp.ge.s32.totalorder %s1822_s30, 1  ;;  %p279_p8 = scmp.lt.s32.totalorder %s1822_s30, 3 }
   0xc   : > { %p280_p9 = pnand %p1516_p7, %p279_p8 }
   0xd   : > { %s1919_s19 = sshll.u32 (!%p280_p9), %s1512_s9, 3  ;;  %s317_s25 = sand.u32 (!%p280_p9), 1, %s1814_s28  }
   0xe   : > { %283 = sbr.rel (%p280_p9) target bundleno = 734 (0x2de), region = 52  ;;  %p321_p10 = scmp.lt.s32.totalorder (!%p280_p9), %s1919_s19, 15 }
   0xf   : > { %s1437_s18 = scalar_lea.hbm (!%p280_p9), %s2400_s8, %s1919_s19 }
  0x13   : > { %v1629_v0 = vld [vmem:[%s2394_s2 + $0x8] sm:$0xff]  ;;  %v1628_v1 = vld [vmem:[%s2394_s2] sm:$0xff]  ;;  %s322_s22 = scalar_select %p321_p10, %s1919_s19, 15  ;;  %vm411_vm0 = vcmask 261120   ;;  %v1633_v10 = vld [vmem:[%s2396_s4 + $0x18] sm:$0xff]  ;;  %v1824_v11 = vmov 0  }
  0x14   : > { %442 = vmatpush.bf16.msra.mxu0 %v1629_v0  ;;  %1638 = vmatpush.bf16.msra.mxu3 %v1629_v0  ;;  %v1632_v16 = vld [vmem:[%s2396_s4 + $0x10] sm:$0xff]  ;;  %v1631_v17 = vld [vmem:[%s2396_s4 + $0x8] sm:$0xff]  ;;  %v1630_v20 = vld [vmem:[%s2396_s4] sm:$0xff]  ;;  %vm545_vm1 = vcmask 523264   ;;  %vm731_vm2 = vcmask 15360   ;;  %vm1165_vm3 = vcmask 1041409  }
  0x15   : > { %s1618_s23 = sshll.u32 %s322_s22, 3  ;;  %s1619_s9 = sshll.u32 %s322_s22, 4  ;;  %1686 = vset.pattern.permute.xlu1 %v1824_v11  ;;  %1685 = vset.pattern.permute.xlu0 %v1824_v11  ;;  %v1984_v30 = vld [vmem:[%s2395_s3] ss:$0 sm:$0xff]  ;;  %vm1167_vm4 = vcmask 1042434   ;;  %vm1169_vm5 = vcmask 1043459  }
  0x16   : > { %s1929_s26 = scalar_lea.vmem %s2392_s0, %s1618_s23  ;;  %s1944_s13 = scalar_lea.vmem %s2393_s1, %s1619_s9  ;;  %574 = vmatpush.bf16.msra.mxu1 %v1633_v10  ;;  %1640 = vmatpush.bf16.msra.mxu2 %v1633_v10  ;;  %vm1171_vm6 = vcmask 1044484   ;;  %vm1173_vm7 = vcmask 1045509   ;;  %vm1175_vm8 = vcmask 1046534   ;;  %vm1177_vm9 = vcmask 1047559  }
  0x17   : > { %v1620_v2 = vld [vmem:[%s1929_s26] sm:$0xff]  ;;  %v1625_v3 = vld [vmem:[%s1929_s26 + $0x28] sm:$0xff]  ;;  %v1626_v5 = vld [vmem:[%s1929_s26 + $0x30] sm:$0xff]  ;;  %1687 = vset.pattern.permute.xlu2 %v1824_v11  ;;  %s1517_s9 = sshll.u32 %s317_s25, 3  ;;  %s1441_s22 = sshll.u32 %s1437_s18, 4  ;;  %s1442_s22 = int_to_ptr.hbm [resolvable:$true] %s1441_s22 }
  0x18   : > { %443 = vmatpush.bf16.msra.mxu0 %v1628_v1  ;;  %1639 = vmatpush.bf16.msra.mxu3 %v1628_v1  ;;  %v1621_v4 = vld [vmem:[%s1929_s26 + $0x8] sm:$0xff]  ;;  %v1622_v6 = vld [vmem:[%s1929_s26 + $0x10] sm:$0xff]  ;;  %v1627_v7 = vld [vmem:[%s1929_s26 + $0x38] sm:$0xff]  ;;  %s319_s20 = scalar_lea.vmem [#allocation2], %s1517_s9  ;;  %s1427_s23 = scalar_lea.sflag [#allocation3], %s317_s25 }
  0x19   : > { %v621_v8 = vld [vmem:[%s1944_s13 + $0x10] sm:$0xff]  ;;  %v619_v9 = vld [vmem:[%s1944_s13] sm:$0xff]  ;;  %v622_v12 = vld [vmem:[%s1944_s13 + $0x18] sm:$0xff]  ;;  %s1439_s21 = sshll.u32 %s319_s20, 4  ;;  %s1780_s19 = scalar_lea.hbm %s2400_s8, 16  ;;  %s1440_s21 = int_to_ptr.vmem [resolvable:$true] %s1439_s21 }
  0x1a   : > { %647 = vperm.xlu1 %1686, %v621_v8   ;;  %637 = vperm.xlu0 %1685, %v619_v9   ;;  %v620_v13 = vld [vmem:[%s1944_s13 + $0x8] sm:$0xff]  ;;  %v1623_v14 = vld [vmem:[%s1929_s26 + $0x18] sm:$0xff]  ;;  %v1624_v15 = vld [vmem:[%s1929_s26 + $0x20] sm:$0xff] }
  0x1b   : > { %1564 = vmatmul.msk.bf16.vlgmr.msra.gmra.mxu0 %vm411_vm0, %v1620_v2  ;;  %1569 = vmatmul.msk.bf16.vlgmr.msra.gmra.mxu3 %vm411_vm0, %v1625_v3  ;;  %v626_v18 = vld [vmem:[%s1944_s13 + $0x38] sm:$0xff]  ;;  %v625_v19 = vld [vmem:[%s1944_s13 + $0x30] sm:$0xff]  ;;  %v623_v21 = vld [vmem:[%s1944_s13 + $0x20] sm:$0xff] }
  0x1c   : > { %575 = vmatpush.bf16.msra.mxu1 %v1632_v16  ;;  %1641 = vmatpush.bf16.msra.mxu2 %v1632_v16  ;;  %v629_v22 = vld [vmem:[%s1944_s13 + $0x50] sm:$0xff]  ;;  %v628_v23 = vld [vmem:[%s1944_s13 + $0x48] sm:$0xff]  ;;  %v631_v26 = vld [vmem:[%s1944_s13 + $0x60] sm:$0xff] }
  0x1d   : > { %657 = vperm.xlu2 %1687, %v623_v21   ;;  %v624_v24 = vld [vmem:[%s1944_s13 + $0x28] sm:$0xff]  ;;  %v627_v27 = vld [vmem:[%s1944_s13 + $0x40] sm:$0xff]  ;;  %v634_v28 = vld [vmem:[%s1944_s13 + $0x78] sm:$0xff] }
  0x1e   : > { %v632_v25 = vld [vmem:[%s1944_s13 + $0x68] sm:$0xff]  ;;  %v630_v33 = vld [vmem:[%s1944_s13 + $0x58] sm:$0xff]  ;;  %v633_v42 = vld [vmem:[%s1944_s13 + $0x70] sm:$0xff] }
  0x20   : > { %576 = vmatpush.bf16.msra.mxu1 %v1631_v17  ;;  %1642 = vmatpush.bf16.msra.mxu2 %v1631_v17 }
  0x22   : > { %652 = vperm.xlu1 %1686, %v622_v12   ;;  %642 = vperm.xlu0 %1685, %v620_v13  }
  0x24   : > { %577 = vmatpush.bf16.msra.mxu1 %v1630_v20  ;;  %1643 = vmatpush.bf16.msra.mxu2 %v1630_v20 }
  0x25   : > { %662 = vperm.xlu2 %1687, %v624_v24  }
  0x2a   : > { %672 = vperm.xlu1 %1686, %v626_v18   ;;  %667 = vperm.xlu0 %1685, %v625_v19  }
  0x2b   : > { %1565 = vmatmul.msk.bf16.gmra.mxu0 %vm411_vm0, %v1621_v4  ;;  %1570 = vmatmul.msk.bf16.gmra.mxu3 %vm411_vm0, %v1626_v5 }
  0x2d   : > { %677 = vperm.xlu2 %1687, %v627_v27  }
  0x32   : > { %687 = vperm.xlu1 %1686, %v629_v22   ;;  %682 = vperm.xlu0 %1685, %v628_v23  }
  0x35   : > { %692 = vperm.xlu2 %1687, %v630_v33  }
  0x3a   : > { %702 = vperm.xlu1 %1686, %v632_v25   ;;  %697 = vperm.xlu0 %1685, %v631_v26  }
  0x3b   : > { %1566 = vmatmul.msk.bf16.gmra.mxu0 %vm411_vm0, %v1622_v6  ;;  %1571 = vmatmul.msk.bf16.gmra.mxu3 %vm411_vm0, %v1627_v7 }
  0x3d   : > { %707 = vperm.xlu2 %1687, %v633_v42  }
  0x42   : > { %712 = vperm.xlu0 %1685, %v634_v28  }
  0x4b   : > { %1567 = vmatmul.msk.bf16.gmra.mxu0 %vm411_vm0, %v1623_v14 }
  0x5b   : > { %1568 = vmatmul.msk.bf16.gmra.mxu0 %vm411_vm0, %v1624_v15 }
  0x77   : > { %v2012_v26 = vpop.permute.xlu2 %657 }
  0x8c   : > { %v648_v25 = vpop.permute.xlu1 %647  ;;  %v638_v27 = vpop.permute.xlu0 %637 }
  0x94   : > { %v653_v28 = vpop.permute.xlu1 %652 }
  0x98   : > { %v445_v29 = vpop.f32.mrf.mxu0 }
  0x99   : > { %v446_v32 = vadd.f32 %v1984_v30, %v445_v29 }
  0x9b   : > { %v485_v36 = vmax.f32 %v446_v32, 0.0  ;;  %v2019_v32 = vpop.permute.xlu2 %662 }
  0x9e   : > { %v470_v31 = vpop.f32.mrf.mxu3 }
  0x9f   : > { %v471_v38 = vadd.f32 %v1984_v30, %v470_v31  ;;  %v2017_v31 = vld [vmem:[%s2397_s5] ss:$0 sm:$0xff] }
  0xa0   : > { %v447_v34 = vpop.f32.mrf.mxu0 }
  0xa1   : > { %v448_v35 = vadd.f32 %v1984_v30, %v447_v34  ;;  %v495_v44 = vmax.f32 %v471_v38, 0.0 }
  0xa3   : > { %v486_v37 = vmax.f32 %v448_v35, 0.0 }
  0xa5   : > { %v501_v39 = vpack.c.bf16 %v486_v37, %v485_v36  ;;  %v2023_v37 = vpop.permute.xlu1 %672 }
  0xa6   : > { %v472_v40 = vpop.f32.mrf.mxu3 }
  0xa7   : > { %v473_v41 = vadd.f32 %v1984_v30, %v472_v40  ;;  %1588 = vmatmul.msk.bf16.vlgmr.msra.gmra.mxu1 %vm545_vm1, %v501_v39  ;;  %v2025_v39 = vpop.permute.xlu2 %677 }
  0xa8   : > { %v450_v43 = vpop.f32.mrf.mxu0 }
  0xa9   : > { %v496_v45 = vmax.f32 %v473_v41, 0.0  ;;  %v451_v48 = vadd.f32 %v1984_v30, %v450_v43 }
  0xab   : > { %v506_v46 = vpack.c.bf16 %v496_v45, %v495_v44  ;;  %v487_v51 = vmax.f32 %v451_v48, 0.0 }
  0xad   : > { %1593 = vmatmul.msk.bf16.vlgmr.msra.gmra.mxu2 %vm545_vm1, %v506_v46 }
  0xae   : > { %v475_v47 = vpop.f32.mrf.mxu3 }
  0xaf   : > { %v476_v52 = vadd.f32 %v1984_v30, %v475_v47 }
  0xb0   : > { %v452_v49 = vpop.f32.mrf.mxu0 }
  0xb1   : > { %v453_v50 = vadd.f32 %v1984_v30, %v452_v49  ;;  %v497_v56 = vmax.f32 %v476_v52, 0.0  ;;  %v688_v49 = vpop.permute.xlu1 %687 }
  0xb3   : > { %v488_v53 = vmax.f32 %v453_v50, 0.0 }
  0xb5   : > { %v502_v54 = vpack.c.bf16 %v488_v53, %v487_v51 }
  0xb6   : > { %v477_v55 = vpop.f32.mrf.mxu3 }
  0xb7   : > { %v478_v57 = vadd.f32 %v1984_v30, %v477_v55  ;;  %1589 = vmatmul.msk.bf16.gmra.mxu1 %vm545_vm1, %v502_v54  ;;  %v693_v55 = vpop.permute.xlu2 %692 }
  0xb8   : > { %v455_v58 = vpop.f32.mrf.mxu0 }
  0xb9   : > { %v498_v59 = vmax.f32 %v478_v57, 0.0  ;;  %v456_v61 = vadd.f32 %v1984_v30, %v455_v58 }
  0xbb   : > { %v507_v60 = vpack.c.bf16 %v498_v59, %v497_v56  ;;  %v489_v0 = vmax.f32 %v456_v61, 0.0 }
  0xbd   : > { %1594 = vmatmul.msk.bf16.gmra.mxu2 %vm545_vm1, %v507_v60 }
  0xbe   : > { %v480_v62 = vpop.f32.mrf.mxu3 }
  0xbf   : > { %v481_v2 = vadd.f32 %v1984_v30, %v480_v62 }
  0xc0   : > { %v457_v63 = vpop.f32.mrf.mxu0 }
  0xc1   : > { %v458_v1 = vadd.f32 %v1984_v30, %v457_v63  ;;  %v499_v6 = vmax.f32 %v481_v2, 0.0 }
  0xc3   : > { %v490_v3 = vmax.f32 %v458_v1, 0.0 }
  0xc5   : > { %v503_v4 = vpack.c.bf16 %v490_v3, %v489_v0 }
  0xc6   : > { %v482_v5 = vpop.f32.mrf.mxu3 }
  0xc7   : > { %v483_v7 = vadd.f32 %v1984_v30, %v482_v5  ;;  %1590 = vmatmul.msk.bf16.gmra.mxu1 %vm545_vm1, %v503_v4 }
  0xc8   : > { %v460_v8 = vpop.f32.mrf.mxu0 }
  0xc9   : > { %v500_v9 = vmax.f32 %v483_v7, 0.0  ;;  %v461_v12 = vadd.f32 %v1984_v30, %v460_v8 }
  0xcb   : > { %v508_v10 = vpack.c.bf16 %v500_v9, %v499_v6  ;;  %v491_v14 = vmax.f32 %v461_v12, 0.0 }
  0xcd   : > { %1595 = vmatmul.msk.bf16.gmra.mxu2 %vm545_vm1, %v508_v10 }
  0xd0   : > { %v462_v13 = vpop.f32.mrf.mxu0 }
  0xd1   : > { %v463_v15 = vadd.f32 %v1984_v30, %v462_v13 }
  0xd3   : > { %v492_v16 = vmax.f32 %v463_v15, 0.0 }
  0xd5   : > { %v504_v17 = vpack.c.bf16 %v492_v16, %v491_v14 }
  0xd7   : > { %1591 = vmatmul.msk.bf16.gmra.mxu1 %vm545_vm1, %v504_v17 }
  0xd8   : > { %v465_v18 = vpop.f32.mrf.mxu0 }
  0xd9   : > { %v466_v19 = vadd.f32 %v1984_v30, %v465_v18  ;;  %v1825_v18 = vmov 1  }
  0xda   : > { %1689 = vset.pattern.permute.xlu0 %v1825_v18 }
  0xdb   : > { %v493_v21 = vmax.f32 %v466_v19, 0.0 }
  0xe0   : > { %v467_v20 = vpop.f32.mrf.mxu0 }
  0xe1   : > { %v468_v22 = vadd.f32 %v1984_v30, %v467_v20  ;;  %v643_v30 = vpop.permute.xlu0 %642 }
  0xe3   : > { %v494_v23 = vmax.f32 %v468_v22, 0.0 }
  0xe5   : > { %v505_v24 = vpack.c.bf16 %v494_v23, %v493_v21 }
  0xe7   : > { %1592 = vmatmul.msk.bf16.gmra.mxu1 %vm545_vm1, %v505_v24 }
  0xe9   : > { %v2029_v44 = vpop.permute.xlu0 %667 }
  0xf1   : > { %v2039_v0 = vpop.permute.xlu0 %682 }
  0xf9   : > { %v698_v23 = vpop.permute.xlu0 %697 }
 0x124   : > { %v579_v29 = vpop.f32.mrf.mxu1 }
 0x125   : > { %v580_v33 = vadd.f32 %v2017_v31, %v579_v29 }
 0x127   : > { %v715_v35 = vadd.f32 %v638_v27, %v580_v33 }
 0x129   : > { %v732_v41 = vsel %vm731_vm2, %v715_v35, -inf }
 0x12c   : > { %v581_v34 = vpop.f32.mrf.mxu1 }
 0x12d   : > { %v582_v36 = vadd.f32 %v2017_v31, %v581_v34 }
 0x12f   : > { %v716_v38 = vadd.f32 %v643_v30, %v582_v36  ;;  %v703_v30 = vpop.permute.xlu1 %702 }
 0x130   : > { %v604_v40 = vpop.f32.mrf.mxu2 }
 0x131   : > { %v733_v42 = vsel %vm731_vm2, %v716_v38, -inf  ;;  %v605_v47 = vadd.f32 %v2017_v31, %v604_v40 }
 0x132   : > { %v734_v43 = vmax.f32 %v732_v41, %v733_v42 }
 0x133   : > { %v725_v52 = vadd.f32 %v688_v49, %v605_v47 }
 0x134   : > { %v735_v45 = vrot.slane %v734_v43, 4  ;;  %v584_v46 = vpop.f32.mrf.mxu1 }
 0x135   : > { %v585_v53 = vadd.f32 %v2017_v31, %v584_v46  ;;  %v777_v60 = vsel %vm731_vm2, %v725_v52, -inf }
 0x136   : > { %v736_v48 = vmax.f32 %v734_v43, %v735_v45 }
 0x137   : > { %v2035_v61 = vadd.f32 %v648_v25, %v585_v53 }
 0x138   : > { %v737_v50 = vrot.slane %v736_v48, 2  ;;  %v606_v51 = vpop.f32.mrf.mxu2 }
 0x139   : > { %v607_v54 = vadd.f32 %v2017_v31, %v606_v51  ;;  %v741_v8 = vsel %vm731_vm2, %v2035_v61, -inf }
 0x13a   : > { %v738_v56 = vmax.f32 %v736_v48, %v737_v50 }
 0x13b   : > { %v726_v57 = vadd.f32 %v693_v55, %v607_v54 }
 0x13c   : > { %v739_v58 = vrot.slane %v738_v56, 1  ;;  %v586_v59 = vpop.f32.mrf.mxu1 }
 0x13d   : > { %v778_v62 = vsel %vm731_vm2, %v726_v57, -inf  ;;  %v587_v63 = vadd.f32 %v2017_v31, %v586_v59 }
 0x13e   : > { %v740_v1 = vmax.f32 %v738_v56, %v739_v58  ;;  %v779_v2 = vmax.f32 %v777_v60, %v778_v62 }
 0x13f   : > { %v718_v3 = vadd.f32 %v653_v28, %v587_v63 }
 0x140   : > { %v804_v4 = vsub.f32 %v715_v35, %v740_v1  ;;  %v805_v5 = vsub.f32 %v716_v38, %v740_v1  ;;  %v780_v6 = vrot.slane %v779_v2, 4  ;;  %v609_v7 = vpop.f32.mrf.mxu2 }
 0x141   : > { %v742_v9 = vsel %vm731_vm2, %v718_v3, -inf  ;;  %v610_v19 = vadd.f32 %v2017_v31, %v609_v7 }
 0x142   : > { %v820_v10 = vmul.f32 1.442695, %v804_v4  ;;  %v822_v12 = vmul.f32 1.442695, %v805_v5  ;;  %v781_v13 = vmax.f32 %v779_v2, %v780_v6  ;;  %v743_v14 = vmax.f32 %v741_v8, %v742_v9 }
 0x143   : > { %v2047_v28 = vadd.f32 %v698_v23, %v610_v19 }
 0x144   : > { %1712 = vpow2.f32 %v820_v10  ;;  %v782_v15 = vrot.slane %v781_v13, 2  ;;  %v744_v16 = vrot.slane %v743_v14, 4  ;;  %v589_v17 = vpop.f32.mrf.mxu1 }
 0x145   : > { %1714 = vpow2.f32 %v822_v12  ;;  %v590_v22 = vadd.f32 %v2017_v31, %v589_v17  ;;  %v786_v49 = vsel %vm731_vm2, %v2047_v28, -inf }
 0x146   : > { %v783_v20 = vmax.f32 %v781_v13, %v782_v15  ;;  %v745_v21 = vmax.f32 %v743_v14, %v744_v16 }
 0x147   : > { %v2057_v40 = vadd.f32 %v2012_v26, %v590_v22 }
 0x148   : > { %v784_v24 = vrot.slane %v783_v20, 1  ;;  %v746_v25 = vrot.slane %v745_v21, 2  ;;  %v611_v27 = vpop.f32.mrf.mxu2 }
 0x149   : > { %v612_v29 = vadd.f32 %v2017_v31, %v611_v27 }
 0x14a   : > { %v2050_v33 = vpop.eup %1712  ;;  %v785_v34 = vmax.f32 %v783_v20, %v784_v24  ;;  %v747_v35 = vmax.f32 %v745_v21, %v746_v25 }
 0x14b   : > { %v2052_v36 = vpop.eup %1714  ;;  %v852_v38 = vsel %vm731_vm2, %v2050_v33, 0.0  ;;  %v2059_v41 = vadd.f32 %v703_v30, %v612_v29 }
 0x14c   : > { %v853_v42 = vsel %vm731_vm2, %v2052_v36, 0.0  ;;  %v814_v43 = vsub.f32 %v725_v52, %v785_v34  ;;  %v815_v45 = vsub.f32 %v726_v57, %v785_v34  ;;  %v748_v46 = vrot.slane %v747_v35, 1  ;;  %v591_v47 = vpop.f32.mrf.mxu1  ;;  %v713_v34 = vpop.permute.xlu0 %712 }
 0x14d   : > { %v854_v48 = vadd.f32 %v853_v42, %v852_v38  ;;  %v787_v50 = vsel %vm731_vm2, %v2059_v41, -inf  ;;  %v592_v51 = vadd.f32 %v2017_v31, %v591_v47  ;;  %v750_v52 = vsel %vm731_vm2, %v2057_v40, -inf }
 0x14e   : > { %v840_v26 = vmul.f32 1.442695, %v814_v43  ;;  %v842_v53 = vmul.f32 1.442695, %v815_v45  ;;  %v749_v54 = vmax.f32 %v747_v35, %v748_v46  ;;  %v788_v55 = vmax.f32 %v786_v49, %v787_v50 }
 0x14f   : > { %v855_v56 = vrot.slane %v854_v48, 4  ;;  %v2071_v57 = vadd.f32 %v2019_v32, %v592_v51 }
 0x150   : > { %1716 = vpow2.f32 %v840_v26  ;;  %v806_v58 = vsub.f32 %v2035_v61, %v749_v54  ;;  %v807_v59 = vsub.f32 %v718_v3, %v749_v54  ;;  %v789_v60 = vrot.slane %v788_v55, 4  ;;  %v614_v62 = vpop.f32.mrf.mxu2  ;;  %v708_v61 = vpop.permute.xlu2 %707 }
 0x151   : > { %1718 = vpow2.f32 %v842_v53  ;;  %v751_v63 = vsel %vm731_vm2, %v2071_v57, -inf  ;;  %v615_v1 = vadd.f32 %v2017_v31, %v614_v62  ;;  %v856_v2 = vadd.f32 %v855_v56, %v854_v48 }
 0x152   : > { %v824_v4 = vmul.f32 1.442695, %v806_v58  ;;  %v826_v5 = vmul.f32 1.442695, %v807_v59  ;;  %v790_v6 = vmax.f32 %v788_v55, %v789_v60  ;;  %v752_v7 = vmax.f32 %v750_v52, %v751_v63 }
 0x153   : > { %v857_v8 = vrot.slane %v856_v2, 2  ;;  %v2079_v15 = vadd.f32 %v708_v61, %v615_v1 }
 0x154   : > { %1720 = vpow2.f32 %v824_v4  ;;  %v791_v32 = vrot.slane %v790_v6, 2  ;;  %v753_v9 = vrot.slane %v752_v7, 4  ;;  %v594_v10 = vpop.f32.mrf.mxu1 }
 0x155   : > { %1722 = vpow2.f32 %v826_v5  ;;  %v858_v3 = vadd.f32 %v857_v8, %v856_v2  ;;  %v595_v16 = vadd.f32 %v2017_v31, %v594_v10  ;;  %v795_v42 = vsel %vm731_vm2, %v2079_v15, -inf }
 0x156   : > { %v2077_v12 = vpop.eup %1716  ;;  %v792_v13 = vmax.f32 %v790_v6, %v791_v32  ;;  %v754_v14 = vmax.f32 %v752_v7, %v753_v9 }
 0x157   : > { %v2082_v17 = vpop.eup %1718  ;;  %v897_v19 = vsel %vm731_vm2, %v2077_v12, 0.0  ;;  %v859_v20 = vrot.slane %v858_v3, 1  ;;  %v2094_v43 = vadd.f32 %v2029_v44, %v595_v16 }
 0x158   : > { %v898_v21 = vsel %vm731_vm2, %v2082_v17, 0.0  ;;  %v793_v22 = vrot.slane %v792_v13, 1  ;;  %v755_v23 = vrot.slane %v754_v14, 2  ;;  %v616_v24 = vpop.f32.mrf.mxu2 }
 0x159   : > { %v899_v25 = vadd.f32 %v898_v21, %v897_v19  ;;  %v617_v27 = vadd.f32 %v2017_v31, %v616_v24  ;;  %v860_v29 = vadd.f32 %v859_v20, %v858_v3  ;;  %v759_v63 = vsel %vm731_vm2, %v2094_v43, -inf }
 0x15a   : > { %v2089_v30 = vpop.eup %1720  ;;  %v794_v35 = vmax.f32 %v792_v13, %v793_v22  ;;  %v756_v38 = vmax.f32 %v754_v14, %v755_v23 }
 0x15b   : > { %v2096_v45 = vpop.eup %1722  ;;  %v900_v46 = vrot.slane %v899_v25, 4  ;;  %v861_v47 = vsel %vm731_vm2, %v2089_v30, 0.0  ;;  %v2100_v48 = vadd.f32 %v713_v34, %v617_v27  ;;  %1724 = vrcp.f32 %v860_v29 }
 0x15c   : > { %v862_v49 = vsel %vm731_vm2, %v2096_v45, 0.0  ;;  %v816_v50 = vsub.f32 %v2047_v28, %v794_v35  ;;  %v817_v51 = vsub.f32 %v2059_v41, %v794_v35  ;;  %v757_v26 = vrot.slane %v756_v38, 1  ;;  %v596_v53 = vpop.f32.mrf.mxu1 }
 0x15d   : > { %v863_v44 = vadd.f32 %v862_v49, %v861_v47  ;;  %v796_v54 = vsel %vm731_vm2, %v2100_v48, -inf  ;;  %v597_v55 = vadd.f32 %v2017_v31, %v596_v53  ;;  %v901_v56 = vadd.f32 %v900_v46, %v899_v25 }
 0x15e   : > { %v844_v52 = vmul.f32 1.442695, %v816_v50  ;;  %v846_v58 = vmul.f32 1.442695, %v817_v51  ;;  %v758_v59 = vmax.f32 %v756_v38, %v757_v26  ;;  %v797_v60 = vmax.f32 %v795_v42, %v796_v54 }
 0x15f   : > { %v864_v62 = vrot.slane %v863_v44, 4  ;;  %v2112_v28 = vadd.f32 %v2023_v37, %v597_v55  ;;  %v902_v41 = vrot.slane %v901_v56, 2 }
 0x160   : > { %1726 = vpow2.f32 %v844_v52  ;;  %v808_v1 = vsub.f32 %v2057_v40, %v758_v59  ;;  %v809_v2 = vsub.f32 %v2071_v57, %v758_v59  ;;  %v798_v4 = vrot.slane %v797_v60, 4 }
 0x161   : > { %v1725_v5 = vpop.eup %1724  ;;  %1728 = vpow2.f32 %v846_v58  ;;  %v760_v6 = vsel %vm731_vm2, %v2112_v28, -inf  ;;  %v903_v7 = vadd.f32 %v902_v41, %v901_v56  ;;  %v865_v8 = vadd.f32 %v864_v62, %v863_v44 }
 0x162   : > { %v828_v32 = vmul.f32 1.442695, %v808_v1  ;;  %v830_v9 = vmul.f32 1.442695, %v809_v2  ;;  %v799_v10 = vmax.f32 %v797_v60, %v798_v4  ;;  %v761_v61 = vmax.f32 %v759_v63, %v760_v6 }
 0x163   : > { %v933_v37 = vmul.f32 %v1725_v5, %v2052_v36  ;;  %v932_v3 = vmul.f32 %v1725_v5, %v2050_v33  ;;  %v904_v13 = vrot.slane %v903_v7, 1  ;;  %v866_v40 = vrot.slane %v865_v8, 2 }
 0x164   : > { %1730 = vpow2.f32 %v828_v32  ;;  %v800_v57 = vrot.slane %v799_v10, 2  ;;  %v762_v14 = vrot.slane %v761_v61, 4  ;;  %v599_v16 = vpop.f32.mrf.mxu1 }
 0x165   : > { %1732 = vpow2.f32 %v830_v9  ;;  %1217 = vperm.xlu0 %1689, %v933_v37   ;;  %980 = vperm.xlu2 %1687, %v933_v37   ;;  %v905_v19 = vadd.f32 %v904_v13, %v903_v7  ;;  %v867_v20 = vadd.f32 %v866_v40, %v865_v8  ;;  %v600_v36 = vadd.f32 %v2017_v31, %v599_v16 }
 0x166   : > { %v2120_v21 = vpop.eup %1726  ;;  %v801_v22 = vmax.f32 %v799_v10, %v800_v57  ;;  %v763_v23 = vmax.f32 %v761_v61, %v762_v14  ;;  %975 = vperm.xlu1 %1686, %v932_v3  }
 0x167   : > { %v2122_v24 = vpop.eup %1728  ;;  %v906_v33 = vsel %vm731_vm2, %v2120_v21, 0.0  ;;  %1734 = vrcp.f32 %v905_v19  ;;  %v868_v25 = vrot.slane %v867_v20, 1  ;;  %v2136_v26 = vadd.f32 %v2025_v39, %v600_v36 }
 0x168   : > { %v907_v27 = vsel %vm731_vm2, %v2122_v24, 0.0  ;;  %v802_v29 = vrot.slane %v801_v22, 1  ;;  %v764_v34 = vrot.slane %v763_v23, 2 }
 0x169   : > { %v908_v35 = vadd.f32 %v907_v27, %v906_v33  ;;  %v869_v38 = vadd.f32 %v868_v25, %v867_v20 }
 0x16a   : > { %v2129_v42 = vpop.eup %1730  ;;  %v803_v46 = vmax.f32 %v801_v22, %v802_v29  ;;  %v765_v47 = vmax.f32 %v763_v23, %v764_v34 }
 0x16b   : > { %v2131_v49 = vpop.eup %1732  ;;  %v909_v50 = vrot.slane %v908_v35, 4  ;;  %v870_v51 = vsel %vm731_vm2, %v2129_v42, 0.0  ;;  %1736 = vrcp.f32 %v869_v38 }
 0x16c   : > { %v871_v53 = vsel %vm731_vm2, %v2131_v49, 0.0  ;;  %v818_v44 = vsub.f32 %v2079_v15, %v803_v46  ;;  %v819_v54 = vsub.f32 %v2100_v48, %v803_v46  ;;  %v766_v55 = vrot.slane %v765_v47, 1  ;;  %v601_v56 = vpop.f32.mrf.mxu1 }
 0x16d   : > { %v1735_v52 = vpop.eup %1734  ;;  %v872_v58 = vadd.f32 %v871_v53, %v870_v51  ;;  %1688 = vset.pattern.permute.xlu2 %v1825_v18  ;;  %v602_v59 = vadd.f32 %v2017_v31, %v601_v56  ;;  %v910_v60 = vadd.f32 %v909_v50, %v908_v35  ;;  %v768_v31 = vsel %vm731_vm2, %v2136_v26, -inf }
 0x16e   : > { %v848_v62 = vmul.f32 1.442695, %v818_v44  ;;  %v850_v39 = vmul.f32 1.442695, %v819_v54  ;;  %v767_v63 = vmax.f32 %v765_v47, %v766_v55  ;;  %1213 = vperm.xlu2 %1688, %v932_v3   ;;  %v943_v41 = vmul.f32 %v1735_v52, %v2082_v17 }
 0x16f   : > { %v873_v1 = vrot.slane %v872_v58, 4  ;;  %v2146_v15 = vadd.f32 %v2039_v0, %v602_v59  ;;  %v911_v48 = vrot.slane %v910_v60, 2 }
 0x170   : > { %1738 = vpow2.f32 %v848_v62  ;;  %v810_v2 = vsub.f32 %v2094_v43, %v767_v63  ;;  %v811_v4 = vsub.f32 %v2112_v28, %v767_v63  ;;  %1257 = vperm.xlu0 %1689, %v943_v41   ;;  %1030 = vperm.xlu1 %1686, %v943_v41   ;;  %v942_v28 = vmul.f32 %v1735_v52, %v2077_v12 }
 0x171   : > { %1740 = vpow2.f32 %v850_v39  ;;  %v769_v5 = vsel %vm731_vm2, %v2146_v15, -inf  ;;  %v912_v17 = vadd.f32 %v911_v48, %v910_v60  ;;  %v874_v6 = vadd.f32 %v873_v1, %v872_v58  ;;  %v1737_v32 = vpop.eup %1736 }
 0x172   : > { %v832_v7 = vmul.f32 1.442695, %v810_v2  ;;  %v834_v0 = vmul.f32 1.442695, %v811_v4  ;;  %v770_v8 = vmax.f32 %v768_v31, %v769_v5  ;;  %v935_v40 = vmul.f32 %v1737_v32, %v2096_v45 }
 0x173   : > { %v913_v9 = vrot.slane %v912_v17, 1  ;;  %v875_v10 = vrot.slane %v874_v6, 2  ;;  %v934_v16 = vmul.f32 %v1737_v32, %v2089_v30 }
 0x174   : > { %1742 = vpow2.f32 %v832_v7  ;;  %v771_v43 = vrot.slane %v770_v8, 4 }
 0x175   : > { %1744 = vpow2.f32 %v834_v0  ;;  %v914_v61 = vadd.f32 %v913_v9, %v912_v17  ;;  %v876_v37 = vadd.f32 %v875_v10, %v874_v6 }
 0x176   : > { %v2155_v3 = vpop.eup %1738  ;;  %v772_v13 = vmax.f32 %v770_v8, %v771_v43  ;;  %1690 = vset.pattern.permute.xlu2 %v1824_v11 }
 0x177   : > { %v2159_v57 = vpop.eup %1740  ;;  %v915_v14 = vsel %vm731_vm2, %v2155_v3, 0.0  ;;  %1025 = vperm.xlu2 %1690, %v942_v28   ;;  %1746 = vrcp.f32 %v914_v61  ;;  %v877_v19 = vrot.slane %v876_v37, 1 }
 0x178   : > { %v916_v12 = vsel %vm731_vm2, %v2159_v57, 0.0  ;;  %v773_v20 = vrot.slane %v772_v13, 2  ;;  %1692 = vset.pattern.permute.xlu0 %v1824_v11  ;;  %990 = vperm.xlu1 %1686, %v935_v40  }
 0x179   : > { %985 = vperm.xlu0 %1692, %v934_v16   ;;  %v917_v45 = vadd.f32 %v916_v12, %v915_v14  ;;  %v878_v25 = vadd.f32 %v877_v19, %v876_v37 }
 0x17a   : > { %v2167_v22 = vpop.eup %1742  ;;  %v774_v23 = vmax.f32 %v772_v13, %v773_v20  ;;  %v335_v13 = vld [vmem:[%s1929_s26] sm:$0xf] }
 0x17b   : > { %v1745_v33 = vpop.eup %1744  ;;  %v879_v36 = vsel %vm731_vm2, %v2167_v22, 0.0  ;;  %v918_v35 = vrot.slane %v917_v45, 4  ;;  %1748 = vrcp.f32 %v878_v25 }
 0x17c   : > { %v880_v30 = vsel %vm731_vm2, %v1745_v33, 0.0  ;;  %v775_v27 = vrot.slane %v774_v23, 1 }
 0x17d   : > { %v1747_v29 = vpop.eup %1746  ;;  %v881_v34 = vadd.f32 %v880_v30, %v879_v36  ;;  %v919_v55 = vadd.f32 %v918_v35, %v917_v45  ;;  %v345_v36 = vld [vmem:[%s1929_s26 + $0x28] sm:$0xff]  }
 0x17e   : > { %v776_v38 = vmax.f32 %v774_v23, %v775_v27  ;;  %v944_v51 = vmul.f32 %v1747_v29, %v2120_v21  ;;  %v945_v4 = vmul.f32 %v1747_v29, %v2122_v24  ;;  %v959_v35 = vunpack.c.h.bf16 %v345_v36 }
 0x17f   : > { %v882_v46 = vrot.slane %v881_v34, 4  ;;  %1691 = vset.pattern.permute.xlu2 %v1825_v18  ;;  %v920_v58 = vrot.slane %v919_v55, 2 }
 0x180   : > { %v812_v47 = vsub.f32 %v2136_v26, %v776_v38  ;;  %v813_v50 = vsub.f32 %v2146_v15, %v776_v38  ;;  %1253 = vperm.xlu2 %1691, %v942_v28   ;;  %1693 = vset.pattern.permute.xlu1 %v1825_v18 }
 0x181   : > { %1696 = vset.pattern.permute.xlu0 %v1825_v18  ;;  %1221 = vperm.xlu1 %1693, %v934_v16   ;;  %v883_v53 = vadd.f32 %v882_v46, %v881_v34  ;;  %v1749_v52 = vpop.eup %1748  ;;  %v921_v39 = vadd.f32 %v920_v58, %v919_v55  ;;  %v958_v34 = vunpack.c.l.bf16 %v345_v36 }
 0x182   : > { %v836_v44 = vmul.f32 1.442695, %v812_v47  ;;  %v838_v54 = vmul.f32 1.442695, %v813_v50  ;;  %1261 = vperm.xlu0 %1696, %v944_v51   ;;  %v936_v60 = vmul.f32 %v1749_v52, %v2129_v42  ;;  %v937_v0 = vmul.f32 %v1749_v52, %v2131_v49 }
 0x183   : > { %v884_v56 = vrot.slane %v883_v53, 2  ;;  %v922_v48 = vrot.slane %v921_v39, 1 }
 0x184   : > { %1750 = vpow2.f32 %v836_v44 }
 0x185   : > { %1752 = vpow2.f32 %v838_v54  ;;  %v885_v26 = vadd.f32 %v884_v56, %v883_v53  ;;  %v923_v17 = vadd.f32 %v922_v48, %v921_v39 }
 0x187   : > { %v886_v59 = vrot.slane %v885_v26, 1 }
 0x188   : > { %1225 = vperm.xlu2 %1691, %v935_v40   ;;  %v2202_v40 = vld [vmem:[%s1929_s26 + $0x4] sm:$0xff]  }
 0x189   : > { %1694 = vset.pattern.permute.xlu1 %v1824_v11  ;;  %v887_v21 = vadd.f32 %v886_v59, %v885_v26  ;;  %v949_v14 = vunpack.c.l.bf16 %v2202_v40 }
 0x18a   : > { %v1751_v62 = vpop.eup %1750  ;;  %1229 = vperm.xlu0 %1696, %v936_v60   ;;  %1035 = vperm.xlu1 %1694, %v944_v51  }
 0x18b   : > { %v1753_v63 = vpop.eup %1752  ;;  %v888_v41 = vsel %vm731_vm2, %v1751_v62, 0.0  ;;  %1754 = vrcp.f32 %v887_v21  ;;  %v2215_v21 = vld [vmem:[%s1929_s26 + $0xc] sm:$0xff]  }
 0x18c   : > { %v889_v1 = vsel %vm731_vm2, %v1753_v63, 0.0  ;;  %1756 = vrcp.f32 %v923_v17 }
 0x18d   : > { %v890_v15 = vadd.f32 %v889_v1, %v888_v41 }
 0x18f   : > { %v891_v2 = vrot.slane %v890_v15, 4 }
 0x190   : > { %1695 = vset.pattern.permute.xlu2 %v1824_v11 }
 0x191   : > { %v1755_v42 = vpop.eup %1754  ;;  %1040 = vperm.xlu2 %1695, %v945_v4   ;;  %v892_v31 = vadd.f32 %v891_v2, %v890_v15  ;;  %v2226_v2 = vld [vmem:[%s1929_s26 + $0x14] sm:$0xff]  }
 0x192   : > { %1697 = vset.pattern.permute.xlu1 %v1825_v18  ;;  %1700 = vset.pattern.permute.xlu0 %v1824_v11  ;;  %v939_v5 = vmul.f32 %v1755_v42, %v1745_v33  ;;  %v1757_v32 = vpop.eup %1756  ;;  %v938_v49 = vmul.f32 %v1755_v42, %v2167_v22 }
 0x193   : > { %1265 = vperm.xlu1 %1697, %v945_v4   ;;  %v893_v6 = vrot.slane %v892_v31, 2  ;;  %v946_v9 = vmul.f32 %v1757_v32, %v2155_v3  ;;  %v947_v28 = vmul.f32 %v1757_v32, %v2159_v57  ;;  %v948_v57 = vunpack.c.l.bf16 %v335_v13  ;;  %v2229_v4 = vld [vmem:[%s1929_s26 + $0x1c] sm:$0xff]  }
 0x194   : > { %1010 = vperm.xlu0 %1700, %v939_v5  }
 0x195   : > { %v894_v7 = vadd.f32 %v893_v6, %v892_v31  ;;  %v953_v6 = vunpack.c.l.bf16 %v2226_v2 }
 0x197   : > { %v895_v8 = vrot.slane %v894_v7, 1 }
 0x199   : > { %1000 = vperm.xlu2 %1695, %v937_v0   ;;  %v896_v24 = vadd.f32 %v895_v8, %v894_v7  ;;  %v952_v7 = vunpack.c.h.bf16 %v2215_v21 }
 0x19b   : > { %1698 = vset.pattern.permute.xlu1 %v1824_v11  ;;  %1758 = vrcp.f32 %v896_v24 }
 0x19c   : > { %995 = vperm.xlu1 %1698, %v936_v60   ;;  %1704 = vset.pattern.permute.xlu0 %v1825_v18 }
 0x1a1   : > { %v1759_v10 = vpop.eup %1758  ;;  %1045 = vperm.xlu2 %1695, %v946_v9  }
 0x1a2   : > { %v940_v43 = vmul.f32 %v1759_v10, %v1751_v62  ;;  %v941_v61 = vmul.f32 %v1759_v10, %v1753_v63  ;;  %v950_v62 = vunpack.c.h.bf16 %v2202_v40  ;;  %v951_v63 = vunpack.c.l.bf16 %v2215_v21 }
 0x1a4   : > { %1245 = vperm.xlu0 %1704, %v940_v43   ;;  %1699 = vset.pattern.permute.xlu1 %v1825_v18 }
 0x1a5   : > { %1233 = vperm.xlu1 %1699, %v937_v0   ;;  %v955_v0 = vunpack.c.l.bf16 %v2229_v4 }
 0x1a9   : > { %1005 = vperm.xlu2 %1695, %v938_v49  }
 0x1ac   : > { %1706 = vset.pattern.permute.xlu0 %v1824_v11 }
 0x1ad   : > { %1050 = vperm.xlu0 %1706, %v947_v28   ;;  %1237 = vperm.xlu1 %1699, %v938_v49  }
 0x1b1   : > { %1701 = vset.pattern.permute.xlu2 %v1825_v18 }
 0x1b2   : > { %1241 = vperm.xlu2 %1701, %v939_v5  }
 0x1b5   : > { %1702 = vset.pattern.permute.xlu1 %v1824_v11  ;;  %1708 = vset.pattern.permute.xlu0 %v1825_v18 }
 0x1b6   : > { %1015 = vperm.xlu1 %1702, %v940_v43   ;;  %v2240_v43 = vld [vmem:[%s1929_s26 + $0x30] sm:$0xf] }
 0x1ba   : > { %1703 = vset.pattern.permute.xlu2 %v1824_v11 }
 0x1bb   : > { %1020 = vperm.xlu2 %1703, %v941_v61  }
 0x1be   : > { %1705 = vset.pattern.permute.xlu1 %v1825_v18 }
 0x1bf   : > { %v981_v37 = vpop.permute.xlu2 %980  ;;  %1249 = vperm.xlu1 %1705, %v941_v61   ;;  %v954_v61 = vunpack.c.h.bf16 %v2226_v2 }
 0x1c0   : > { %v1054_v11 = vmul.f32 %v981_v37, %v949_v14 }
 0x1c2   : > { %v1070_v33 = vsel %vm411_vm0, %v1054_v11, 0.0 }
 0x1c3   : > { %1707 = vset.pattern.permute.xlu2 %v1825_v18 }
 0x1c4   : > { %1273 = vperm.xlu2 %1707, %v947_v28  }
 0x1c7   : > { %1269 = vperm.xlu1 %1705, %v946_v9   ;;  %v2237_v9 = vld [vmem:[%s1929_s26 + $0x34] sm:$0xff]  }
 0x1c8   : > { %v1214_v3 = vpop.permute.xlu2 %1213 }
 0x1c9   : > { %v1276_v19 = vmul.f32 %v1214_v3, %v948_v57 }
 0x1cb   : > { %v1292_v23 = vsel %vm411_vm0, %v1276_v19, 0.0 }
 0x1d1   : > { %v1026_v16 = vpop.permute.xlu2 %1025 }
 0x1d2   : > { %v1063_v38 = vmul.f32 %v1026_v16, %v958_v34 }
 0x1d4   : > { %v1114_v50 = vsel %vm411_vm0, %v1063_v38, 0.0 }
 0x1d7   : > { %v1218_v12 = vpop.permute.xlu0 %1217 }
 0x1d8   : > { %v1277_v20 = vmul.f32 %v1218_v12, %v949_v14  ;;  %v976_v22 = vpop.permute.xlu1 %975  ;;  %v960_v14 = vunpack.c.l.bf16 %v2240_v43 }
 0x1d9   : > { %v1053_v45 = vmul.f32 %v976_v22, %v948_v57  ;;  %v961_v57 = vunpack.c.l.bf16 %v2237_v9 }
 0x1da   : > { %v1293_v18 = vsel %vm411_vm0, %v1277_v20, 0.0  ;;  %v1254_v29 = vpop.permute.xlu2 %1253 }
 0x1db   : > { %v1294_v25 = vadd.f32 %v1293_v18, %v1292_v23  ;;  %v1069_v30 = vsel %vm411_vm0, %v1053_v45, 0.0  ;;  %v1286_v28 = vmul.f32 %v1254_v29, %v958_v34 }
 0x1dc   : > { %v1071_v27 = vadd.f32 %v1070_v33, %v1069_v30  ;;  %v1635_v30 = vld [vmem:[%s2398_s6 + $0x8] sm:$0xff] }
 0x1dd   : > { %v1295_v5 = vrot.slane %v1294_v25, 4  ;;  %v1337_v22 = vsel %vm411_vm0, %v1286_v28, 0.0  ;;  %1201 = vmatpush.bf16.msrb.mxu2 %v1635_v30 }
 0x1de   : > { %v1072_v17 = vrot.slane %v1071_v27, 4 }
 0x1df   : > { %v1296_v3 = vadd.f32 %v1295_v5, %v1294_v25 }
 0x1e0   : > { %v1073_v13 = vadd.f32 %v1072_v17, %v1071_v27  ;;  %v1637_v27 = vld [vmem:[%s2398_s6 + $0x18] sm:$0xff] }
 0x1e1   : > { %v1297_v18 = vrot.slane %v1296_v3, 2  ;;  %1417 = vmatpush.bf16.msrb.mxu3 %v1637_v27  ;;  %v2275_v17 = vld [vmem:[%s1929_s26 + $0x3c] sm:$0xf] }
 0x1e2   : > { %v1031_v46 = vpop.permute.xlu1 %1030  ;;  %v1226_v53 = vpop.permute.xlu2 %1225  ;;  %v1074_v33 = vrot.slane %v1073_v13, 2 }
 0x1e3   : > { %v1064_v47 = vmul.f32 %v1031_v46, %v959_v35  ;;  %v1258_v54 = vpop.permute.xlu0 %1257  ;;  %v1279_v29 = vmul.f32 %v1226_v53, %v951_v63 }
 0x1e4   : > { %v1287_v32 = vmul.f32 %v1258_v54, %v959_v35 }
 0x1e5   : > { %v1115_v51 = vsel %vm411_vm0, %v1064_v47, 0.0  ;;  %v1302_v21 = vsel %vm411_vm0, %v1279_v29, 0.0 }
 0x1e6   : > { %v1116_v44 = vadd.f32 %v1115_v51, %v1114_v50  ;;  %v1338_v19 = vsel %vm411_vm0, %v1287_v32, 0.0 }
 0x1e7   : > { %v1339_v34 = vadd.f32 %v1338_v19, %v1337_v22  ;;  %v2288_v22 = vld [vmem:[%s1929_s26 + $0x24] sm:$0xf]  ;;  %s1774_s26 = sshra.s32 %s1442_s22, 4  ;;  %s1775_s26 = int_to_ptr.hbm [resolvable:$true] %s1774_s26 }
 0x1e8   : > { %v1117_v11 = vrot.slane %v1116_v44, 4  ;;  %v957_v29 = vunpack.c.l.bf16 %v2288_v22  ;;  %s1776_s24 = scalar_lea.hbm %s1775_s26, 8  ;;  %p1781_p0 = scmp.lt.s32.totalorder %s1775_s26, %s2400_s8 }
 0x1e9   : > { %p1777_p11 = scmp.ne.s32.totalorder %s1775_s26, %s1776_s24  ;;  %p1782_p1 = scmp.lt.s32.totalorder %s1780_s19, %s1776_s24 }
 0x1ea   : > { %v991_v55 = vpop.permute.xlu1 %990  ;;  %v1118_v47 = vadd.f32 %v1117_v11, %v1116_v44 }
 0x1eb   : > { %v1041_v56 = vpop.permute.xlu2 %1040  ;;  %v986_v52 = vpop.permute.xlu0 %985  ;;  %v1056_v15 = vmul.f32 %v991_v55, %v951_v63  ;;  %p1778_p12 = pnand %p1777_p11, %p1906_p5  ;;  %p1783_p2 = por %p1782_p1, %p1781_p0 }
 0x1ec   : > { %v1055_v48 = vmul.f32 %v986_v52, %v950_v62  ;;  %v1066_v50 = vmul.f32 %v1041_v56, %v961_v57  ;;  %v962_v52 = vunpack.c.h.bf16 %v2237_v9  ;;  %v1340_v56 = vrot.slane %v1339_v34, 4 }
 0x1ed   : > { %v1079_v42 = vsel %vm411_vm0, %v1056_v15, 0.0  ;;  %p1779_p13 = pneg %p1778_p12 }
 0x1ee   : > { %v1078_v31 = vsel %vm411_vm0, %v1055_v48, 0.0  ;;  %v1119_v48 = vrot.slane %v1118_v47, 2 }
 0x1ef   : > { %v1080_v10 = vadd.f32 %v1079_v42, %v1078_v31  ;;  %v1124_v42 = vsel %vm411_vm0, %v1066_v50, 0.0  ;;  %p1784_p3 = pnand %p1783_p2, %p1779_p13 }
 0x1f1   : > { %v1081_v12 = vrot.slane %v1080_v10, 4 }
 0x1f3   : > { %v1222_v26 = vpop.permute.xlu1 %1221  ;;  %v1001_v58 = vpop.permute.xlu2 %1000  ;;  %v1082_v51 = vadd.f32 %v1081_v12, %v1080_v10 }
 0x1f4   : > { %v2212_v59 = vpop.permute.xlu0 %1261  ;;  %v1058_v40 = vmul.f32 %v1001_v58, %v953_v6  ;;  %v1278_v45 = vmul.f32 %v1222_v26, %v950_v62  ;;  %v1298_v26 = vadd.f32 %v1297_v18, %v1296_v3  ;;  %v2269_v58 = vadd.f32 %v1074_v33, %v1073_v13 }
 0x1f5   : > { %v1083_v31 = vrot.slane %v1082_v51, 2  ;;  %v963_v13 = vunpack.c.l.bf16 %v2275_v17 }
 0x1f6   : > { %v1088_v36 = vsel %vm411_vm0, %v1058_v40, 0.0  ;;  %v1301_v55 = vsel %vm411_vm0, %v1278_v45, 0.0  ;;  %v1299_v32 = vrot.slane %v1298_v26, 1  ;;  %v1076_v10 = vrot.slane %v2269_v58, 1 }
 0x1f7   : > { %v1303_v5 = vadd.f32 %v1302_v21, %v1301_v55  ;;  %v1341_v40 = vadd.f32 %v1340_v56, %v1339_v34 }
 0x1fb   : > { %v2221_v41 = vpop.permute.xlu2 %1045 }
 0x1fc   : > { %v1036_v60 = vpop.permute.xlu1 %1035  ;;  %v2223_v1 = vpop.permute.xlu0 %1229 }
 0x1fd   : > { %v1065_v25 = vmul.f32 %v1036_v60, %v960_v14 }
 0x1ff   : > { %v1123_v60 = vsel %vm411_vm0, %v1065_v25, 0.0 }
 0x203   : > { %v1006_v37 = vpop.permute.xlu2 %1005 }
 0x204   : > { %v1059_v23 = vmul.f32 %v1006_v37, %v954_v61 }
 0x205   : > { %v2218_v39 = vpop.permute.xlu1 %1265 }
 0x206   : > { %v1011_v8 = vpop.permute.xlu0 %1010  ;;  %v1096_v53 = vsel %vm411_vm0, %v1059_v23, 0.0  ;;  %v1289_v23 = vmul.f32 %v2218_v39, %v961_v57  ;;  %v2305_v39 = vadd.f32 %v1299_v32, %v1298_v26  ;;  %v1342_v57 = vrot.slane %v1341_v40, 2 }
 0x207   : > { %v1060_v16 = vmul.f32 %v1011_v8, %v955_v0  ;;  %v1280_v8 = vmul.f32 %v2223_v1, %v952_v7  ;;  %v1120_v1 = vadd.f32 %v1119_v48, %v1118_v47 }
 0x209   : > { %v1097_v35 = vsel %vm411_vm0, %v1060_v16, 0.0  ;;  %v1304_v16 = vrot.slane %v1303_v5, 4  ;;  %v1310_v12 = vsel %vm411_vm0, %v1280_v8, 0.0 }
 0x20a   : > { %v1098_v44 = vadd.f32 %v1097_v35, %v1096_v53 }
 0x20c   : > { %v1242_v62 = vpop.permute.xlu2 %1241  ;;  %v1099_v28 = vrot.slane %v1098_v44, 4 }
 0x20e   : > { %v996_v24 = vpop.permute.xlu1 %995  ;;  %v1100_v18 = vadd.f32 %v1099_v28, %v1098_v44  ;;  %v1347_v44 = vsel %vm411_vm0, %v1289_v23, 0.0 }
 0x20f   : > { %v1057_v49 = vmul.f32 %v996_v24, %v952_v7  ;;  %v1125_v24 = vadd.f32 %v1124_v42, %v1123_v60  ;;  %v1084_v7 = vadd.f32 %v1083_v31, %v1082_v51  ;;  %v1121_v51 = vrot.slane %v1120_v1, 1 }
 0x211   : > { %v1087_v20 = vsel %vm411_vm0, %v1057_v49, 0.0  ;;  %v1067_v49 = vmul.f32 %v2221_v41, %v962_v52  ;;  %v1085_v60 = vrot.slane %v1084_v7, 1  ;;  %v1122_v32 = vadd.f32 %v1121_v51, %v1120_v1  ;;  %v1636_v1 = vld [vmem:[%s2398_s6 + $0x10] sm:$0xff] }
 0x212   : > { %v1089_v38 = vadd.f32 %v1088_v36, %v1087_v20  ;;  %v1126_v20 = vrot.slane %v1125_v24, 4  ;;  %v1634_v36 = vld [vmem:[%s2398_s6] sm:$0xff]  ;;  %1418 = vmatpush.bf16.msrb.mxu3 %v1636_v1 }
 0x213   : > { %v1132_v45 = vsel %vm411_vm0, %v1067_v49, 0.0  ;;  %1202 = vmatpush.bf16.msrb.mxu2 %v1634_v36  ;;  %v1086_v49 = vadd.f32 %v1085_v60, %v1084_v7  ;;  %v1364_v7 = vpack.c.bf16 %v2305_v39, %v2305_v39  ;;  %v1146_v23 = vpack.c.bf16 %v1122_v32, %v1122_v32 }
 0x214   : > { %v1090_v63 = vrot.slane %v1089_v38, 4  ;;  %v1127_v47 = vadd.f32 %v1126_v20, %v1125_v24 }
 0x215   : > { %v1021_v50 = vpop.permute.xlu2 %1020 }
 0x216   : > { %v2262_v46 = vpop.permute.xlu0 %1245  ;;  %v1091_v37 = vadd.f32 %v1090_v63, %v1089_v38  ;;  %v1288_v38 = vmul.f32 %v2212_v59, %v960_v14  ;;  %v1062_v26 = vmul.f32 %v1021_v50, %v957_v29  ;;  %v956_v63 = vunpack.c.h.bf16 %v2229_v4 }
 0x217   : > { %v1234_v54 = vpop.permute.xlu1 %1233  ;;  %v1077_v59 = vadd.f32 %v1076_v10, %v2269_v58  ;;  %v1343_v14 = vadd.f32 %v1342_v57, %v1341_v40  ;;  %v1128_v48 = vrot.slane %v1127_v47, 2 }
 0x218   : > { %v1281_v15 = vmul.f32 %v1234_v54, %v953_v6  ;;  %v1283_v6 = vmul.f32 %v1242_v62, %v955_v0  ;;  %v1092_v30 = vrot.slane %v1091_v37, 2  ;;  %v1101_v54 = vrot.slane %v1100_v18, 2 }
 0x219   : > { %v1141_v58 = vpack.c.bf16 %v1077_v59, %v1077_v59  ;;  %v1129_v10 = vadd.f32 %v1128_v48, %v1127_v47 }
 0x21a   : > { %v1311_v3 = vsel %vm411_vm0, %v1281_v15, 0.0  ;;  %v1320_v25 = vsel %vm411_vm0, %v1283_v6, 0.0  ;;  %v1093_v21 = vadd.f32 %v1092_v30, %v1091_v37  ;;  %v1346_v15 = vsel %vm411_vm0, %v1288_v38, 0.0 }
 0x21b   : > { %v1312_v33 = vadd.f32 %v1311_v3, %v1310_v12  ;;  %v1348_v31 = vadd.f32 %v1347_v44, %v1346_v15  ;;  %v1106_v3 = vsel %vm411_vm0, %v1062_v26, 0.0  ;;  %v1130_v30 = vrot.slane %v1129_v10, 1 }
 0x21c   : > { %v1094_v28 = vrot.slane %v1093_v21, 1 }
 0x21d   : > { %v1313_v55 = vrot.slane %v1312_v33, 4 }
 0x21e   : > { %v1274_v59 = vpop.permute.xlu2 %1273 }
 0x21f   : > { %v1051_v19 = vpop.permute.xlu0 %1050  ;;  %v1238_v11 = vpop.permute.xlu1 %1237  ;;  %v1314_v8 = vadd.f32 %v1313_v55, %v1312_v33  ;;  %v1162_v55 = vunpack.c.l.b16 %v1146_v23 }
 0x220   : > { %v1068_v41 = vmul.f32 %v1051_v19, %v963_v13  ;;  %v1282_v0 = vmul.f32 %v1238_v11, %v954_v61  ;;  %v1305_v61 = vadd.f32 %v1304_v16, %v1303_v5  ;;  %v1102_v5 = vadd.f32 %v1101_v54, %v1100_v18 }
 0x221   : > { %v1344_v19 = vrot.slane %v1343_v14, 1  ;;  %v1349_v11 = vrot.slane %v1348_v31, 4  ;;  %v1315_v20 = vrot.slane %v1314_v8, 2  ;;  %v1142_v18 = vpack.c.bf16 %v1086_v49, %v1086_v49 }
 0x222   : > { %v1133_v27 = vsel %vm411_vm0, %v1068_v41, 0.0  ;;  %v1319_v2 = vsel %vm411_vm0, %v1282_v0, 0.0  ;;  %v1306_v62 = vrot.slane %v1305_v61, 2  ;;  %v1103_v12 = vrot.slane %v1102_v5, 1 }
 0x223   : > { %v1134_v34 = vadd.f32 %v1133_v27, %v1132_v45  ;;  %v1321_v35 = vadd.f32 %v1320_v25, %v1319_v2  ;;  %v1095_v41 = vadd.f32 %v1094_v28, %v1093_v21  ;;  %v1157_v25 = vunpack.c.l.b16 %v1141_v58 }
 0x224   : > { %v1307_v37 = vadd.f32 %v1306_v62, %v1305_v61  ;;  %v1284_v27 = vmul.f32 %v2262_v46, %v956_v63  ;;  %v2324_v61 = vadd.f32 %v1344_v19, %v1343_v14  ;;  %v1316_v57 = vadd.f32 %v1315_v20, %v1314_v8 }
 0x225   : > { %v1135_v53 = vrot.slane %v1134_v34, 4  ;;  %v1322_v56 = vrot.slane %v1321_v35, 4  ;;  %v1143_v47 = vpack.c.bf16 %v1095_v41, %v1095_v41  ;;  %v1131_v21 = vadd.f32 %v1130_v30, %v1129_v10 }
 0x226   : > { %v1308_v33 = vrot.slane %v1307_v37, 1  ;;  %v1328_v46 = vsel %vm411_vm0, %v1284_v27, 0.0 }
 0x227   : > { %v1136_v43 = vadd.f32 %v1135_v53, %v1134_v34  ;;  %v1323_v6 = vadd.f32 %v1322_v56, %v1321_v35  ;;  %v1350_v34 = vadd.f32 %v1349_v11, %v1348_v31  ;;  %v1104_v35 = vadd.f32 %v1103_v12, %v1102_v5 }
 0x228   : > { %v1016_v42 = vpop.permute.xlu1 %1015  ;;  %v1158_v53 = vunpack.c.l.b16 %v1142_v18  ;;  %v1309_v60 = vadd.f32 %v1308_v33, %v1307_v37  ;;  %v1159_v15 = vunpack.c.l.b16 %v1143_v47  ;;  %v1147_v8 = vpack.c.bf16 %v1131_v21, %v1131_v21 }
 0x229   : > { %v1061_v24 = vmul.f32 %v1016_v42, %v956_v63  ;;  %v1137_v4 = vrot.slane %v1136_v43, 2  ;;  %v1324_v0 = vrot.slane %v1323_v6, 2  ;;  %v1351_v26 = vrot.slane %v1350_v34, 2 }
 0x22a   : > { %v1144_v63 = vpack.c.bf16 %v1104_v35, %v1104_v35  ;;  %v1365_v42 = vpack.c.bf16 %v1309_v60, %v1309_v60 }
 0x22b   : > { %v1105_v16 = vsel %vm411_vm0, %v1061_v24, 0.0  ;;  %v1138_v36 = vadd.f32 %v1137_v4, %v1136_v43  ;;  %v1325_v50 = vadd.f32 %v1324_v0, %v1323_v6  ;;  %v1317_v43 = vrot.slane %v1316_v57, 1 }
 0x22c   : > { %v1107_v40 = vadd.f32 %v1106_v3, %v1105_v16  ;;  %v1291_v24 = vmul.f32 %v1274_v59, %v963_v13  ;;  %v1352_v49 = vadd.f32 %v1351_v26, %v1350_v34  ;;  %v1160_v28 = vunpack.c.l.b16 %v1144_v63 }
 0x22d   : > { %v1139_v44 = vrot.slane %v1138_v36, 1  ;;  %v1326_v48 = vrot.slane %v1325_v50, 1  ;;  %v1318_v6 = vadd.f32 %v1317_v43, %v1316_v57  ;;  %v1163_v0 = vunpack.c.l.b16 %v1147_v8 }
 0x22e   : > { %v1108_v45 = vrot.slane %v1107_v40, 4  ;;  %v1356_v17 = vsel %vm411_vm0, %v1291_v24, 0.0  ;;  %v1380_v57 = vunpack.c.l.b16 %v1364_v7 }
 0x22f   : > { %v1140_v31 = vadd.f32 %v1139_v44, %v1138_v36  ;;  %v1327_v16 = vadd.f32 %v1326_v48, %v1325_v50  ;;  %v1366_v12 = vpack.c.bf16 %v1318_v6, %v1318_v6  ;;  %v1381_v36 = vunpack.c.l.b16 %v1365_v42  ;;  %v1711_v42 = vld [vmem:[%s2399_s7] ss:$0 sm:$0xff] }
 0x230   : > { %v1109_v2 = vadd.f32 %v1108_v45, %v1107_v40 }
 0x231   : > { %v1250_v38 = vpop.permute.xlu1 %1249  ;;  %v1148_v40 = vpack.c.bf16 %v1140_v31, %v1140_v31  ;;  %v1367_v45 = vpack.c.bf16 %v1327_v16, %v1327_v16  ;;  %v1382_v27 = vunpack.c.l.b16 %v1366_v12 }
 0x232   : > { %v1110_v51 = vrot.slane %v1109_v2, 2  ;;  %v1285_v54 = vmul.f32 %v1250_v38, %v957_v29  ;;  %v1166_v29 = vsel %vm1165_vm3, %v1158_v53, %v1157_v25  ;;  %v1353_v25 = vrot.slane %v1352_v49, 1 }
 0x233   : > { %v1168_v4 = vsel %vm1167_vm4, %v1159_v15, %v1166_v29  ;;  %v1369_v38 = vpack.c.bf16 %v2324_v61, %v2324_v61  ;;  %v1383_v47 = vunpack.c.l.b16 %v1367_v45 }
 0x234   : > { %v1111_v56 = vadd.f32 %v1110_v51, %v1109_v2  ;;  %v1329_v62 = vsel %vm411_vm0, %v1285_v54, 0.0  ;;  %v1170_v41 = vsel %vm1169_vm5, %v1160_v28, %v1168_v4  ;;  %v1354_v53 = vadd.f32 %v1353_v25, %v1352_v49 }
 0x235   : > { %v1330_v14 = vadd.f32 %v1329_v62, %v1328_v46  ;;  %v1385_v46 = vunpack.c.l.b16 %v1369_v38 }
 0x236   : > { %v1112_v22 = vrot.slane %v1111_v56, 1 }
 0x237   : > { %v1331_v5 = vrot.slane %v1330_v14, 4 }
 0x238   : > { %v1113_v32 = vadd.f32 %v1112_v22, %v1111_v56  ;;  %v1370_v56 = vpack.c.bf16 %v1354_v53, %v1354_v53 }
 0x239   : > { %v1332_v37 = vadd.f32 %v1331_v5, %v1330_v14  ;;  %v1270_v3 = vpop.permute.xlu1 %1269 }
 0x23a   : > { %v1145_v58 = vpack.c.bf16 %v1113_v32, %v1113_v32  ;;  %v1290_v10 = vmul.f32 %v1270_v3, %v962_v52  ;;  %v1164_v52 = vunpack.c.l.b16 %v1148_v40  ;;  %v1386_v43 = vunpack.c.l.b16 %v1370_v56 }
 0x23b   : > { %v1333_v19 = vrot.slane %v1332_v37, 2 }
 0x23c   : > { %v1161_v13 = vunpack.c.l.b16 %v1145_v58  ;;  %v1355_v11 = vsel %vm411_vm0, %v1290_v10, 0.0 }
 0x23d   : > { %v1334_v20 = vadd.f32 %v1333_v19, %v1332_v37  ;;  %v1357_v1 = vadd.f32 %v1356_v17, %v1355_v11 }
 0x23e   : > { %v1172_v9 = vsel %vm1171_vm6, %v1161_v13, %v1170_v41 }
 0x23f   : > { %v1335_v23 = vrot.slane %v1334_v20, 1  ;;  %v1358_v18 = vrot.slane %v1357_v1, 4  ;;  %v1174_v33 = vsel %vm1173_vm7, %v1162_v55, %v1172_v9  ;;  %v1388_v55 = vsel %vm1165_vm3, %v1381_v36, %v1380_v57 }
 0x240   : > { %v1176_v30 = vsel %vm1175_vm8, %v1163_v0, %v1174_v33  ;;  %v1389_v60 = vsel %vm1167_vm4, %v1382_v27, %v1388_v55 }
 0x241   : > { %v1336_v2 = vadd.f32 %v1335_v23, %v1334_v20  ;;  %v1359_v34 = vadd.f32 %v1358_v18, %v1357_v1  ;;  %v1178_v35 = vsel %vm1177_vm9, %v1164_v52, %v1176_v30  ;;  %v1390_v39 = vsel %vm1169_vm5, %v1383_v47, %v1389_v60 }
 0x242   : > { %v1179_v50 = vpack.c.b16 %v1178_v35, %v1178_v35 }
 0x243   : > { %v1368_v51 = vpack.c.bf16 %v1336_v2, %v1336_v2  ;;  %v1360_v54 = vrot.slane %v1359_v34, 2 }
 0x244   : > { %1604 = vmatmul.msk.bf16.vlgmr.msrb.gmra.mxu2 %vm411_vm0, %v1179_v50 }
 0x245   : > { %v1384_v44 = vunpack.c.l.b16 %v1368_v51  ;;  %v1361_v21 = vadd.f32 %v1360_v54, %v1359_v34 }
 0x247   : > { %v1362_v7 = vrot.slane %v1361_v21, 1  ;;  %v1391_v61 = vsel %vm1171_vm6, %v1384_v44, %v1390_v39 }
 0x248   : > { %v1392_v62 = vsel %vm1173_vm7, %v1385_v46, %v1391_v61 }
 0x249   : > { %v1363_v26 = vadd.f32 %v1362_v7, %v1361_v21  ;;  %v1393_v14 = vsel %vm1175_vm8, %v1386_v43, %v1392_v62 }
 0x24b   : > { %v1371_v63 = vpack.c.bf16 %v1363_v26, %v1363_v26 }
 0x24d   : > { %v1387_v59 = vunpack.c.l.b16 %v1371_v63 }
 0x24f   : > { %v1394_v15 = vsel %vm1177_vm9, %v1387_v59, %v1393_v14 }
 0x250   : > { %v1395_v48 = vpack.c.b16 %v1394_v15, %v1394_v15 }
 0x252   : > { %1613 = vmatmul.msk.bf16.vlgmr.msrb.gmra.mxu3 %vm411_vm0, %v1395_v48 }
 0x2c7   : > { %v1204_v22 = vpop.f32.mrf.mxu2 }
 0x2c8   : > { %v1211_v31 = vadd.f32 %v1711_v42, %v1204_v22 }
 0x2cf   : > { %v1206_v29 = vpop.f32.mrf.mxu2 }
 0x2d5   : > { %v1420_v5 = vpop.f32.mrf.mxu3 }
 0x2d6   : > { %v1424_v8 = vadd.f32 %v1420_v5, %v1211_v31 }
 0x2d8   : > { %1425 = vst [vmem:[%s319_s20] sm:$0xff] %v1424_v8 }
 0x2d9   : > { %1787 = shalt.err (!%p1784_p3)
}
 0x2da   : > { %1644 = dma.vmem_to_hbm [thread:$0]  (%p1906_p5), %s1440_s21, 128, %s1442_s22, %s1427_s23  }
 0x2dd   : > { %v1422_v24 = vpop.f32.mrf.mxu3 }
 0x2de PF: > { %p1650_p4 = scmp.ge.s32.totalorder %s1822_s30, 2  ;;  %s1453_s25 = sand.u32 1, %s1810_s27  }
 0x2df   : > { %s1454_s17 = scalar_lea.sflag [#allocation3], %s1453_s25 }
 0x2e0   : > { %p1647_p7 = pnand %p1650_p4, %p1910_p6 }
 0x2e2   : > { %p1648_p8 = pneg %p1647_p7 }
 0x2e4   : > { %1805 = dma.done.wait (%p1648_p8), %s1454_s17, 128  }
 0x2e5   : > { %1807 = vsyncadd (%p1648_p8), %s1454_s17, 4294967168  ;;  %p18_p9 = scmp.ge.s32.totalorder %s1894_s11, 4   ;;  %s2403_s27 = smov %s1814_s28 }
 0x2e6   : > { %s2404_s28 = smov %s1818_s29  ;;  %s2405_s29 = smov %s1904_s14 }
 0x2e7   : > { %s2406_s30 = smov %s1894_s11  ;;  %20 = sbr.rel (!%p18_p9) target bundleno = 3 (0x3), region = 90 }
 0x2ec   :  { %1460 = vsyncpa [#allocation3], 1 }
 0x2ed   :  { %1462 = vsyncpa [#allocation3 + $0x1], 1 }

</bundles_post_ra>
